<compile_context>
chip_gen: v7x
topology: tpu7x:2x2x1
jax: 0.10.0
libtpu: 0.0.40
codegen_flags: <defaults>
</compile_context>

<pallas_src>
import math

import jax
import jax.numpy as jnp
from jax.experimental import pallas as pl
from jax.experimental.pallas import tpu as pltpu

# ---- MagFace hyper-parameters (match the PyTorch module defaults) ----
MARGIN_AM = 0.0
SCALE = 32.0
L_A = 10.0
U_A = 110.0
L_MARGIN = 0.45
U_MARGIN = 0.8
LAMDA = 20.0
_EPS = 1e-12  # F.normalize default eps

# bf16 MXU inputs (f32 accumulation). Use jnp.float32 for bit-closer parity.
MXU_INPUT_DTYPE = jnp.bfloat16


def _round_up(x, m):
    return ((x + m - 1) // m) * m


def magface_kernel(feats_ref, w_ref, labels_ref,          # inputs
                   out_ref, loss_g_ref,                   # outputs
                   feats_n_ref, cos_m_ref, sin_m_ref):    # scratch
    j = pl.program_id(1)
    tile_n = w_ref.shape[1]

    # ---- per-B-tile row statistics: computed once, reused for every C tile.
    @pl.when(j == 0)
    def _row_stats():
        feats = feats_ref[...].astype(jnp.float32)                 # (TM, D)
        sq_sum = jnp.sum(feats * feats, axis=1, keepdims=True)     # (TM, 1)
        raw_norm = jnp.sqrt(sq_sum)
        x_norm = jnp.clip(raw_norm, L_A, U_A)

        ada_margin = ((U_MARGIN - L_MARGIN) / (U_A - L_A)
                      * (x_norm - L_A) + L_MARGIN)
        cos_m_ref[...] = jnp.cos(ada_margin)
        sin_m_ref[...] = jnp.sin(ada_margin)

        # F.normalize(feats): per-row L2 normalization with raw (unclamped) norm
        feats_n_ref[...] = (feats / jnp.maximum(raw_norm, _EPS)
                            ).astype(feats_n_ref.dtype)

        # g(a) regularizer, lane-dense (TM, 128) store written once per B tile.
        loss_g = (1.0 / (U_A * U_A)) * x_norm + 1.0 / x_norm        # (TM, 1)
        loss_g_ref[...] = jnp.broadcast_to(
            LAMDA * loss_g, loss_g_ref.shape).astype(loss_g_ref.dtype)

    # ---- per (B-tile, C-tile) work: normalize weight columns + MXU matmul.
    # Note: with several B tiles the column normalization is recomputed per B
    # tile; precompute kernel_norm in a separate pass if B >> TILE_M.
    w = w_ref[...].astype(jnp.float32)                              # (D, TN)
    col_norm = jnp.sqrt(jnp.sum(w * w, axis=0, keepdims=True))      # (1, TN)
    kernel_norm = (w / jnp.maximum(col_norm, _EPS)).astype(feats_n_ref.dtype)

    cos_theta = jnp.dot(feats_n_ref[...], kernel_norm,
                        preferred_element_type=jnp.float32)         # (TM, TN)
    cos_theta = jnp.clip(cos_theta, -1.0, 1.0)

    # One-hot mask against global column ids for this C tile.
    labels = labels_ref[...]                                        # (TM, 1)
    col_ids = jax.lax.broadcasted_iota(jnp.int32, cos_theta.shape, 1)
    one_hot = (col_ids + j * tile_n) == labels                      # (TM, TN)

    # Margin math only on the per-row target logit (masked lane reduction).
    cos_m = cos_m_ref[...]                                          # (TM, 1)
    sin_m = sin_m_ref[...]                                          # (TM, 1)
    target_cos = jnp.sum(jnp.where(one_hot, cos_theta, 0.0),
                         axis=1, keepdims=True)                     # (TM, 1)
    target_sin = jnp.sqrt(1.0 - target_cos * target_cos)
    target_mod = target_cos * cos_m - target_sin * sin_m
    # cos(pi - m) == -cos(m)
    target_mod = jnp.where(target_cos > -cos_m,
                           target_mod, target_cos - MARGIN_AM)      # (TM, 1)

    out = jnp.where(one_hot, target_mod, cos_theta) * SCALE
    out_ref[...] = out.astype(out_ref.dtype)


def magface_forward(feats, weight, labels, *, tile_m=None, tile_n=512):
    """feats: (B, D) f32, weight: (D, C) f32, labels: (B,) int -> (out, loss_g)."""
    B, D = feats.shape
    D2, C = weight.shape
    assert D == D2

    # ---- pad / tile sizing (MXU- and (8,128)-aligned) ----
    d_p = _round_up(D, 128)
    if tile_m is None:
        tile_m = 128 if B >= 128 else _round_up(B, 8)
    tile_m = min(tile_m, 128) if B >= 128 else _round_up(min(B, 128), 8)
    b_p = _round_up(B, tile_m)
    tile_n = min(tile_n, _round_up(C, 128))
    c_p = _round_up(C, tile_n)
    nb, nc = b_p // tile_m, c_p // tile_n

    feats_p = jnp.pad(feats.astype(jnp.float32), ((0, b_p - B), (0, d_p - D)))
    weight_p = jnp.pad(weight.astype(jnp.float32), ((0, d_p - D), (0, c_p - C)))
    labels_p = jnp.pad(labels.astype(jnp.int32).reshape(B, 1),
                       ((0, b_p - B), (0, 0)))

    out_p, loss_g_p = pl.pallas_call(
        magface_kernel,
        out_shape=(
            jax.ShapeDtypeStruct((b_p, c_p), jnp.float32),
            jax.ShapeDtypeStruct((b_p, 128), jnp.float32),   # lane-dense loss_g
        ),
        grid_spec=pltpu.PrefetchScalarGridSpec(
            num_scalar_prefetch=0,
            grid=(nb, nc),
            in_specs=[
                pl.BlockSpec((tile_m, d_p), lambda i, j: (i, 0)),    # feats
                pl.BlockSpec((d_p, tile_n), lambda i, j: (0, j)),    # weight
                pl.BlockSpec((tile_m, 1), lambda i, j: (i, 0)),      # labels
            ],
            out_specs=(
                pl.BlockSpec((tile_m, tile_n), lambda i, j: (i, j)),  # logits
                pl.BlockSpec((tile_m, 128), lambda i, j: (i, 0)),     # loss_g
            ),
            scratch_shapes=[
                pltpu.VMEM((tile_m, d_p), MXU_INPUT_DTYPE),  # normalized feats
                pltpu.VMEM((tile_m, 1), jnp.float32),        # cos(margin)
                pltpu.VMEM((tile_m, 1), jnp.float32),        # sin(margin)
            ],
        ),
        compiler_params=pltpu.CompilerParams(
            dimension_semantics=("parallel", "arbitrary"),
            vmem_limit_bytes=32 * 1024 * 1024,
        ),
    )(feats_p, weight_p, labels_p)

    return out_p[:B, :C], loss_g_p[:B, :1]


def init_magface_weight(key, feat_dim, num_class):
    """Mimic: weight.uniform_(-1, 1).renorm_(2, 1, 1e-5).mul_(1e5)."""
    w = jax.random.uniform(key, (feat_dim, num_class), jnp.float32, -1.0, 1.0)
    col_norm = jnp.linalg.norm(w, axis=0, keepdims=True)
    scale = jnp.where(col_norm > 1e-5, 1e-5 / (col_norm + 1e-7), 1.0)
    return w * scale * 1e5


def magface_reference(feats, weight, labels):
    """Pure-JAX f32 reference mirroring the PyTorch forward."""
    raw_norm = jnp.linalg.norm(feats, axis=1, keepdims=True)
    x_norm = jnp.clip(raw_norm, L_A, U_A)
    ada = (U_MARGIN - L_MARGIN) / (U_A - L_A) * (x_norm - L_A) + L_MARGIN
    cos_m, sin_m = jnp.cos(ada), jnp.sin(ada)
    loss_g = (1.0 / (U_A * U_A)) * x_norm + 1.0 / x_norm
    kn = weight / jnp.maximum(jnp.linalg.norm(weight, axis=0, keepdims=True), _EPS)
    fn = feats / jnp.maximum(raw_norm, _EPS)
    cos = jnp.clip(fn @ kn, -1.0, 1.0)
    sin = jnp.sqrt(1.0 - cos * cos)
    cos_t_m = cos * cos_m - sin * sin_m
    min_ct = jnp.cos(math.pi - ada)
    cos_t_m = jnp.where(cos > min_ct, cos_t_m, cos - MARGIN_AM)
    one_hot = jax.nn.one_hot(labels, weight.shape[1], dtype=bool)
    out = jnp.where(one_hot, cos_t_m, cos) * SCALE
    return out, LAMDA * loss_g


if __name__ == "__main__":
    B, D, C = 8, 256, 1024          # batch, feat_dim, num_class (2 C-tiles)

    key = jax.random.PRNGKey(0)
    k_feat, k_w, k_lab = jax.random.split(key, 3)

    # feature norms ~ 2*sqrt(256) = 32, inside [l_a, u_a] margin regime
    feats = jax.random.normal(k_feat, (B, D), jnp.float32) * 2.0
    weight = init_magface_weight(k_w, D, C)
    labels = jax.random.randint(k_lab, (B,), 0, C, jnp.int32)

    out, loss_g = magface_forward(feats, weight, labels, tile_n=512)
    jax.block_until_ready((out, loss_g))

    assert out.shape == (B, C) and loss_g.shape == (B, 1)
    assert bool(jnp.all(jnp.isfinite(out))) and bool(jnp.all(jnp.isfinite(loss_g)))

    ref_out, ref_loss = magface_reference(feats, weight, labels)
    # bf16 MXU inputs (f32 accumulation) -> loose tolerance on scaled logits.
    assert float(jnp.max(jnp.abs(out - ref_out))) < 0.5
    assert float(jnp.max(jnp.abs(loss_g - ref_loss))) < 1e-3

    print("KERNEL_OK")
</pallas_src>

<mosaic_0001>
module attributes {stable_mosaic.version = 11 : i64} {
  func.func @magface_kernel(%arg0: i32, %arg1: i32, %arg2: memref<8x256xf32, #tpu.memory_space<vmem>>, %arg3: memref<256x512xf32, #tpu.memory_space<vmem>>, %arg4: memref<8x1xi32, #tpu.memory_space<vmem>>, %arg5: memref<8x512xf32, #tpu.memory_space<vmem>>, %arg6: memref<8x128xf32, #tpu.memory_space<vmem>>, %arg7: memref<8x256xbf16, #tpu.memory_space<vmem>>, %arg8: memref<8x1xf32, #tpu.memory_space<vmem>>, %arg9: memref<8x1xf32, #tpu.memory_space<vmem>>) attributes {dimension_semantics = [#tpu.dimension_semantics<parallel>, #tpu.dimension_semantics<arbitrary>], iteration_bounds = array<i64: 1, 2>, scalar_prefetch = 0 : i64, scratch_operands = 3 : i64, tpu.core_type = #tpu.core_type<tc>, window_params = [{transform_indices = @transform_0, window_bounds = array<i64: 8, 256>}, {transform_indices = @transform_1, window_bounds = array<i64: 256, 512>}, {transform_indices = @transform_2, window_bounds = array<i64: 8, 1>}, {transform_indices = @transform_3, window_bounds = array<i64: 8, 512>}, {transform_indices = @transform_4, window_bounds = array<i64: 8, 128>}]} {
    %c0_i32 = arith.constant 0 : i32
    %0 = arith.cmpi eq, %arg1, %c0_i32 : i32
    %1 = arith.extui %0 : i1 to i32
    %c0_i32_0 = arith.constant 0 : i32
    %2 = arith.cmpi ne, %1, %c0_i32_0 : i32
    scf.if %2 {
      %c0_22 = arith.constant 0 : index
      %c0_23 = arith.constant 0 : index
      %51 = vector.load %arg2[%c0_22, %c0_23] : memref<8x256xf32, #tpu.memory_space<vmem>>, vector<8x256xf32>
      %52 = arith.mulf %51, %51 : vector<8x256xf32>
      %cst_24 = arith.constant dense<0.000000e+00> : vector<8xf32>
      %53 = vector.multi_reduction <add>, %52, %cst_24 [1] : vector<8x256xf32> to vector<8xf32>
      %54 = vector.shape_cast %53 : vector<8xf32> to vector<8x1xf32>
      %55 = math.sqrt %54 : vector<8x1xf32>
      %cst_25 = arith.constant 1.000000e+01 : f32
      %cst_26 = arith.constant 1.100000e+02 : f32
      %56 = vector.broadcast %cst_25 : f32 to vector<8x1xf32>
      %57 = arith.maximumf %56, %55 : vector<8x1xf32>
      %58 = vector.broadcast %cst_26 : f32 to vector<8x1xf32>
      %59 = arith.minimumf %58, %57 : vector<8x1xf32>
      %cst_27 = arith.constant 1.000000e+01 : f32
      %60 = vector.broadcast %cst_27 : f32 to vector<8x1xf32>
      %61 = arith.subf %59, %60 : vector<8x1xf32>
      %cst_28 = arith.constant 3.500000e-03 : f32
      %62 = vector.broadcast %cst_28 : f32 to vector<8x1xf32>
      %63 = arith.mulf %62, %61 : vector<8x1xf32>
      %cst_29 = arith.constant 4.500000e-01 : f32
      %64 = vector.broadcast %cst_29 : f32 to vector<8x1xf32>
      %65 = arith.addf %63, %64 : vector<8x1xf32>
      %66 = math.cos %65 : vector<8x1xf32>
      %c0_30 = arith.constant 0 : index
      %c0_31 = arith.constant 0 : index
      %67 = vector.load %arg8[%c0_30, %c0_31] : memref<8x1xf32, #tpu.memory_space<vmem>>, vector<8x1xf32>
      tpu.vector_store %arg8[%c0_30, %c0_31], %66 {strides = array<i32>} : memref<8x1xf32, #tpu.memory_space<vmem>>, vector<8x1xf32>,
      %68 = math.sin %65 : vector<8x1xf32>
      %c0_32 = arith.constant 0 : index
      %c0_33 = arith.constant 0 : index
      %69 = vector.load %arg9[%c0_32, %c0_33] : memref<8x1xf32, #tpu.memory_space<vmem>>, vector<8x1xf32>
      tpu.vector_store %arg9[%c0_32, %c0_33], %68 {strides = array<i32>} : memref<8x1xf32, #tpu.memory_space<vmem>>, vector<8x1xf32>,
      %cst_34 = arith.constant 9.99999996E-13 : f32
      %70 = vector.broadcast %cst_34 : f32 to vector<8x1xf32>
      %71 = arith.maximumf %55, %70 : vector<8x1xf32>
      %72 = vector.broadcast %71 : vector<8x1xf32> to vector<8x256xf32>
      %73 = arith.divf %51, %72 : vector<8x256xf32>
      %74 = arith.truncf %73 : vector<8x256xf32> to vector<8x256xbf16>
      %c0_35 = arith.constant 0 : index
      %c0_36 = arith.constant 0 : index
      %75 = vector.load %arg7[%c0_35, %c0_36] : memref<8x256xbf16, #tpu.memory_space<vmem>>, vector<8x256xbf16>
      tpu.vector_store %arg7[%c0_35, %c0_36], %74 {strides = array<i32>} : memref<8x256xbf16, #tpu.memory_space<vmem>>, vector<8x256xbf16>,
      %cst_37 = arith.constant 8.26446266E-5 : f32
      %76 = vector.broadcast %cst_37 : f32 to vector<8x1xf32>
      %77 = arith.mulf %76, %59 : vector<8x1xf32>
      %cst_38 = arith.constant 1.000000e+00 : f32
      %78 = vector.broadcast %cst_38 : f32 to vector<8x1xf32>
      %79 = arith.divf %78, %59 : vector<8x1xf32>
      %80 = arith.addf %77, %79 : vector<8x1xf32>
      %cst_39 = arith.constant 2.000000e+01 : f32
      %81 = vector.broadcast %cst_39 : f32 to vector<8x1xf32>
      %82 = arith.mulf %81, %80 : vector<8x1xf32>
      %83 = vector.shape_cast %82 : vector<8x1xf32> to vector<8x1xf32>
      %84 = vector.broadcast %83 : vector<8x1xf32> to vector<8x128xf32>
      %c0_40 = arith.constant 0 : index
      %c0_41 = arith.constant 0 : index
      %85 = vector.load %arg6[%c0_40, %c0_41] : memref<8x128xf32, #tpu.memory_space<vmem>>, vector<8x128xf32>
      tpu.vector_store %arg6[%c0_40, %c0_41], %84 {strides = array<i32>} : memref<8x128xf32, #tpu.memory_space<vmem>>, vector<8x128xf32>,
    } else {
    }
    %c0 = arith.constant 0 : index
    %c0_1 = arith.constant 0 : index
    %3 = vector.load %arg3[%c0, %c0_1] : memref<256x512xf32, #tpu.memory_space<vmem>>, vector<256x512xf32>
    %4 = arith.mulf %3, %3 : vector<256x512xf32>
    %cst = arith.constant dense<0.000000e+00> : vector<512xf32>
    %5 = vector.multi_reduction <add>, %4, %cst [0] : vector<256x512xf32> to vector<512xf32>
    %6 = vector.shape_cast %5 : vector<512xf32> to vector<1x512xf32>
    %7 = math.sqrt %6 : vector<1x512xf32>
    %cst_2 = arith.constant 9.99999996E-13 : f32
    %8 = vector.broadcast %cst_2 : f32 to vector<1x512xf32>
    %9 = arith.maximumf %7, %8 : vector<1x512xf32>
    %10 = vector.broadcast %9 : vector<1x512xf32> to vector<256x512xf32>
    %11 = arith.divf %3, %10 : vector<256x512xf32>
    %12 = arith.truncf %11 : vector<256x512xf32> to vector<256x512xbf16>
    %c0_3 = arith.constant 0 : index
    %c0_4 = arith.constant 0 : index
    %13 = vector.load %arg7[%c0_3, %c0_4] : memref<8x256xbf16, #tpu.memory_space<vmem>>, vector<8x256xbf16>
    %cst_5 = arith.constant dense<0.000000e+00> : vector<8x512xf32>
    %14 = tpu.matmul %13, %12, %cst_5 {dimension_numbers = #tpu.dot_dimension_numbers<[1], [0], [0], [1], [0, 0, 1, 1], [], []>} : vector<8x256xbf16>, vector<256x512xbf16>, vector<8x512xf32> -> vector<8x512xf32>
    %cst_6 = arith.constant -1.000000e+00 : f32
    %cst_7 = arith.constant 1.000000e+00 : f32
    %15 = vector.broadcast %cst_6 : f32 to vector<8x512xf32>
    %16 = arith.maximumf %15, %14 : vector<8x512xf32>
    %17 = vector.broadcast %cst_7 : f32 to vector<8x512xf32>
    %18 = arith.minimumf %17, %16 : vector<8x512xf32>
    %c0_8 = arith.constant 0 : index
    %c0_9 = arith.constant 0 : index
    %19 = vector.load %arg4[%c0_8, %c0_9] : memref<8x1xi32, #tpu.memory_space<vmem>>, vector<8x1xi32>
    %20 = tpu.iota {dimensions = array<i32: 1>} : vector<8x512xi32>
    %c512_i32 = arith.constant 512 : i32
    %21 = arith.muli %arg1, %c512_i32 : i32
    %22 = vector.broadcast %21 : i32 to vector<8x512xi32>
    %23 = arith.addi %20, %22 : vector<8x512xi32>
    %24 = vector.broadcast %19 : vector<8x1xi32> to vector<8x512xi32>
    %25 = arith.cmpi eq, %23, %24 : vector<8x512xi32>
    %c0_10 = arith.constant 0 : index
    %c0_11 = arith.constant 0 : index
    %26 = vector.load %arg8[%c0_10, %c0_11] : memref<8x1xf32, #tpu.memory_space<vmem>>, vector<8x1xf32>
    %c0_12 = arith.constant 0 : index
    %c0_13 = arith.constant 0 : index
    %27 = vector.load %arg9[%c0_12, %c0_13] : memref<8x1xf32, #tpu.memory_space<vmem>>, vector<8x1xf32>
    %cst_14 = arith.constant 0.000000e+00 : f32
    %28 = vector.broadcast %cst_14 : f32 to vector<8x512xf32>
    %29 = arith.select %25, %18, %28 : vector<8x512xi1>, vector<8x512xf32>
    %cst_15 = arith.constant dense<0.000000e+00> : vector<8xf32>
    %30 = vector.multi_reduction <add>, %29, %cst_15 [1] : vector<8x512xf32> to vector<8xf32>
    %31 = vector.shape_cast %30 : vector<8xf32> to vector<8x1xf32>
    %32 = arith.mulf %31, %31 : vector<8x1xf32>
    %cst_16 = arith.constant 1.000000e+00 : f32
    %33 = vector.broadcast %cst_16 : f32 to vector<8x1xf32>
    %34 = arith.subf %33, %32 : vector<8x1xf32>
    %35 = math.sqrt %34 : vector<8x1xf32>
    %36 = arith.mulf %31, %26 : vector<8x1xf32>
    %37 = arith.mulf %35, %27 : vector<8x1xf32>
    %38 = arith.subf %36, %37 : vector<8x1xf32>
    %cst_17 = arith.constant 0.000000e+00 : f32
    %39 = vector.broadcast %cst_17 : f32 to vector<8x1xf32>
    %40 = arith.subf %39, %26 : vector<8x1xf32>
    %41 = arith.cmpf ogt, %31, %40 : vector<8x1xf32>
    %cst_18 = arith.constant 0.000000e+00 : f32
    %42 = vector.broadcast %cst_18 : f32 to vector<8x1xf32>
    %43 = arith.subf %31, %42 : vector<8x1xf32>
    %44 = arith.select %41, %38, %43 : vector<8x1xi1>, vector<8x1xf32>
    %45 = vector.shape_cast %44 : vector<8x1xf32> to vector<8x1xf32>
    %46 = vector.broadcast %45 : vector<8x1xf32> to vector<8x512xf32>
    %47 = arith.select %25, %46, %18 : vector<8x512xi1>, vector<8x512xf32>
    %cst_19 = arith.constant 3.200000e+01 : f32
    %48 = vector.broadcast %cst_19 : f32 to vector<8x512xf32>
    %49 = arith.mulf %47, %48 : vector<8x512xf32>
    %c0_20 = arith.constant 0 : index
    %c0_21 = arith.constant 0 : index
    %50 = vector.load %arg5[%c0_20, %c0_21] : memref<8x512xf32, #tpu.memory_space<vmem>>, vector<8x512xf32>
    tpu.vector_store %arg5[%c0_20, %c0_21], %49 {strides = array<i32>} : memref<8x512xf32, #tpu.memory_space<vmem>>, vector<8x512xf32>,
    return
  }
  func.func @transform_0(%arg0: i32, %arg1: i32) -> (i32, i32) {
    %c0_i32 = arith.constant 0 : i32
    %c0_i32_0 = arith.constant 0 : i32
    return %arg0, %c0_i32 : i32, i32
  }
  func.func @transform_1(%arg0: i32, %arg1: i32) -> (i32, i32) {
    %c0_i32 = arith.constant 0 : i32
    %c0_i32_0 = arith.constant 0 : i32
    return %c0_i32, %arg1 : i32, i32
  }
  func.func @transform_2(%arg0: i32, %arg1: i32) -> (i32, i32) {
    %c0_i32 = arith.constant 0 : i32
    %c0_i32_0 = arith.constant 0 : i32
    return %arg0, %c0_i32 : i32, i32
  }
  func.func @transform_3(%arg0: i32, %arg1: i32) -> (i32, i32) {
    %c0_i32 = arith.constant 0 : i32
    return %arg0, %arg1 : i32, i32
  }
  func.func @transform_4(%arg0: i32, %arg1: i32) -> (i32, i32) {
    %c0_i32 = arith.constant 0 : i32
    %c0_i32_0 = arith.constant 0 : i32
    return %arg0, %c0_i32 : i32, i32
  }
}

</mosaic_0001>

<bundles_post_ra>
// kernel: tpu_custom_call.1
= control target key start
LH: loop header
LB: loop body
LE: loop exit
PB: predicated region body
PF: predicated region fallthrough
CT: control target
= control target key end

     0   :  { %10 = vsyncpa [#allocation6], 0  ;;  %s3119_s0 = inlined_call_operand.hbm [shape: f32[8,256], index: 0, kind: input, shape index: {}]   ;;  %s3120_s1 = inlined_call_operand.hbm [shape: f32[256,1024], index: 1, kind: input, shape index: {}]   ;;  %s3121_s2 = inlined_call_operand.vmem [shape: s32[8,1], index: 2, kind: input, shape index: {}]   ;;  %s3122_s3 = inlined_call_operand.hbm [shape: f32[8,1024], index: 3, kind: output, shape index: {0}]   ;;  %s3123_s4 = inlined_call_operand.hbm [shape: f32[8,128], index: 4, kind: output, shape index: {1}]  }
   0x1   :  { %11 = vsyncpa [#allocation9], 0 }
   0x2   :  { %13 = vsyncpa [#allocation9 + $0x1], 0 }
   0x3   :  { %14 = vsyncpa [#allocation7], 0 }
   0x4   :  { %16 = vsyncpa [#allocation7 + $0x1], 0 }
   0x5   :  { %17 = vsyncpa [#allocation12], 0  ;;  %s1853_s15 = smov 0   ;;  %s1855_s16 = smov 0  }
   0x6   :  { %s1857_s17 = smov 0   ;;  %s1859_s18 = smov 0  }
   0x7   :  { %s1861_s19 = smov 0   ;;  %s1863_s20 = smov 0  }
   0x8 LB: > { %s1471_s21 = sadd.s32 4294967295, %s1812_s20   ;;  %s1472_s22 = sadd.s32 4294967294, %s1812_s20   ;;  %s1812_s20 = sphi %s1863_s20, %s23_s20   ;;  %s1808_s19 = sphi %s1861_s19, %s3414_s19   ;;  %s1804_s18 = sphi %s1859_s18, %s3413_s18   ;;  %s1800_s17 = sphi %s1857_s17, %s3412_s17   ;;  %s1796_s16 = sphi %s1855_s16, %s3411_s16   ;;  %s1792_s15 = sphi %s1853_s15, %s3410_s15  }
   0x9   : > { %p75_p0 = scmp.ne.s32.totalorder %s1800_s17, %s1796_s16  ;;  %p76_p1 = scmp.eq.s32.totalorder %s1812_s20, 0 }
   0xa   : > { %p81_p2 = scmp.ne.s32.totalorder %s1796_s16, %s1792_s15  ;;  %p1891_p3 = scmp.eq.s32.totalorder %s1471_s21, 0 }
   0xb   : > { %p1895_p4 = scmp.eq.s32.totalorder %s1471_s21, 1  ;;  %p1899_p5 = por %p76_p1, %p75_p0 }
   0xc   : > { %s3218_s24 = scalar_select %p1891_p3, 1, 0 }
   0xd   : > { %s3219_s25 = scalar_select %p1895_p4, 1, 0 }
   0xe   : > { %p139_p6 = scmp.eq.s32.totalorder %s1472_s22, 1  ;;  %p1905_p7 = por %p1891_p3, %p81_p2 }
   0xf   : > { %p1911_p8 = por %p1895_p4, %p75_p0  ;;  %p1473_p10 = scmp.ge.s32.totalorder %s1812_s20, 1 }
  0x10   : > { %s3221_s27 = scalar_select %p1905_p7, 1, 0 }
  0x11   : > { %s3222_s28 = scalar_select %p1911_p8, 1, 0 }
  0x12   : > { %p1915_p9 = por %p139_p6, %p81_p2  ;;  %p172_p11 = scmp.lt.s32.totalorder %s1812_s20, 3 }
  0x13   : > { %s1814_s5 = smov [#allocation5]   ;;  %p1541_p1 = scmp.lt.s32.totalorder %s1812_s20, 2 }
  0x14   : > { %s3223_s29 = scalar_select %p1915_p9, 1, 0 }
  0x15   : > { %p1922_p13 = pnand %p1473_p10, %p172_p11  ;;  %s188_s6 = sshll.u32 %s1814_s5, 4  ;;  %s189_s6 = int_to_ptr.vmem [resolvable:$true] %s188_s6 }
  0x16   : > { %p1931_p8 = pnand %p1541_p1, %p1899_p5  ;;  %s32_s9 = sadd.s32 1, %s1808_s19 }
  0x17   : > { %s3224_s30 = scalar_select %p1922_p13, 1, 0 }
  0x18   : > { %p1528_p0 = pneg %p1922_p13  ;;  %p1942_p6 = scmp.ge.s32.totalorder %s32_s9, 2 }
  0x19   : > { %s3225_s7 = scalar_select %p1931_p8, 1, 0 }
  0x1a   : > { %p1937_p2 = pnand %p1528_p0, %p1891_p3  ;;  %s206_s11 = sand.u32 1, %s1800_s17  }
  0x1b   : > { %s3227_s10 = scalar_select %p1942_p6, 1, 0 }
  0x1c   : > { %s1638_s14 = scalar_lea.hbm %s3119_s0, 256  ;;  %p1640_p10 = pneg %p1937_p2 }
  0x1d   : > { %p1639_p5 = scmp.ne.s32.totalorder %s3119_s0, %s1638_s14  ;;  %p1645_p0 = scmp.lt.u32.totalorder %s1638_s14, %s3119_s0 }
  0x1f   : > { %p1641_p11 = pnand %p1640_p10, %p1639_p5 }
  0x21   : > { %p1642_p1 = pneg %p1641_p11 }
  0x23   : > { %p1647_p12 = pnand %p1645_p0, %p1642_p1 }
  0x25   : > { %1650 = shalt.err (!%p1647_p12)
}
  0x26   : > { %s1651_s23 = scalar_lea.vmem %s189_s6, 256  ;;  %p1659_p3 = scmp.lt.s32.totalorder %s189_s6, %s189_s6 }
  0x27   : > { %p1652_p9 = scmp.ne.s32.totalorder %s189_s6, %s1651_s23  ;;  %p1660_p13 = scmp.lt.s32.totalorder %s1651_s23, %s1651_s23 }
  0x29   : > { %p1654_p4 = pnand %p1652_p9, %p1640_p10  ;;  %p1661_p8 = por %p1660_p13, %p1659_p3 }
  0x2b   : > { %p1655_p7 = pneg %p1654_p4 }
  0x2d   : > { %p1662_p6 = pnand %p1661_p8, %p1655_p7 }
  0x2f   : > { %1665 = shalt.err (!%p1662_p6)
}
  0x30   : > { %1531 = dma.hbm_to_vmem [thread:$0]  (!%p1937_p2), %s3119_s0, 256, %s189_s6, [#allocation6]  }
  0x31   : > { %p3228_p9 = scmp.ne.s32.totalorder %s3227_s10, 0  ;;  %s1477_s23 = sshll.u32 %s206_s11, 10 }
  0x32   : > { %s1509_s21 = sshll.u32 %s1808_s19, 9  ;;  %s210_s5 = scalar_lea.vmem [#allocation8], %s1477_s23 }
  0x33   : > { %s3416_s9 = smov (%p3228_p9, %s32_s9), 0  ;;  %s1973_s26 = scalar_lea.hbm %s3120_s1, %s1509_s21 }
  0x34   : > { %s65_s14 = ssub.s32 %s1808_s19, %s3416_s9  ;;  %s217_s12 = sshll.u32 %s210_s5, 4  ;;  %s1980_s12 = int_to_ptr.vmem [resolvable:$true] %s217_s12 }
  0x35   : > { %p66_p3 = scmp.eq.s32.totalorder %s65_s14, 0  ;;  %s3229_s6 = sadd.s32 1, %s1800_s17 }
  0x36   : > { %s1982_s13 = scalar_lea.sflag [#allocation9], %s206_s11  ;;  %s1666_s14 = scalar_lea.hbm %s1973_s26, 16384 }
  0x37   : > { %s1978_s10 = scalar_select %p66_p3, %s1800_s17, %s3229_s6  }
  0x38   : > { %p1667_p4 = scmp.ne.s32.totalorder %s1973_s26, %s1666_s14  ;;  %p3230_p7 = scmp.ne.s32.totalorder %s3225_s7, 0 }
  0x39   : > { %s1671_s23 = scalar_lea.hbm %s3120_s1, 32768  ;;  %p1672_p2 = scmp.lt.u32.totalorder %s1973_s26, %s3120_s1 }
  0x3a   : > { %p1668_p8 = pneg %p3230_p7  ;;  %p1673_p6 = scmp.lt.u32.totalorder %s1671_s23, %s1666_s14 }
  0x3b   : > { %p1675_p10 = scmp.lt.u32.totalorder %s1666_s14, %s1973_s26 }
  0x3c   : > { %p1669_p12 = pnand %p1668_p8, %p1667_p4  ;;  %p1674_p5 = por %p1673_p6, %p1672_p2 }
  0x3e   : > { %p1670_p13 = pneg %p1669_p12  ;;  %p1676_p11 = por %p1675_p10, %p1674_p5 }
  0x40   : > { %p1677_p1 = pnand %p1676_p11, %p1670_p13 }
  0x42   : > { %1680 = shalt.err (!%p1677_p1)
}
  0x43   : > { %s1681_s11 = scalar_lea.vmem %s1980_s12, 16384  ;;  %s1815_s6 = smov [#allocation8]  }
  0x44   : > { %p1682_p0 = scmp.ne.s32.totalorder %s1980_s12, %s1681_s11  ;;  %s1686_s21 = sshll.u32 %s1815_s6, 4  ;;  %s1687_s21 = int_to_ptr.vmem [resolvable:$false] %s1686_s21 }
  0x45   : > { %s1688_s8 = scalar_lea.vmem %s1687_s21, 32768  ;;  %p1689_p4 = scmp.lt.s32.totalorder %s1980_s12, %s1687_s21 }
  0x46   : > { %p1684_p9 = pnand %p1682_p0, %p1668_p8  ;;  %p1690_p12 = scmp.lt.s32.totalorder %s1688_s8, %s1681_s11 }
  0x48   : > { %p1685_p3 = pneg %p1684_p9  ;;  %p1691_p2 = por %p1690_p12, %p1689_p4 }
  0x4a   : > { %p1692_p6 = pnand %p1691_p2, %p1685_p3 }
  0x4c   : > { %1695 = shalt.err (!%p1692_p6)
}
  0x4d   : > { %s1816_s14 = smov 1024   ;;  %s1817_s23 = smov 512  }
  0x4e   : > { %s1818_s22 = smov 32   ;;  %p3231_p8 = scmp.ne.s32.totalorder %s3224_s30, 0 }
  0x4f   : > { %1535 = dma.hbm_to_vmem [thread:$0]  (!%p3230_p7), %s1973_s26, 16384, %s1980_s12, %s1982_s13, %s1816_s14, %s1817_s23, %s1818_s22  }
  0x50   : > { %229 = sbr.rel (%p3231_p8) target bundleno = 1095 (0x447), region = 32 }
  0x57   : > { %p3232_p13 = scmp.ne.s32.totalorder %s3218_s24, 0 }
  0x59   : > { %1775 = dma.done.wait (%p3232_p13), [#allocation6], 256  }
  0x5a   : > { %1777 = vsyncadd (%p3232_p13), [#allocation6], 4294967040  ;;  %s2017_s5 = sand.u32 1, %s1796_s16   ;;  %p3233_p7 = scmp.ne.s32.totalorder %s3221_s27, 0 }
  0x5b   : > { %s1482_s11 = sshll.u32 %s2017_s5, 10  ;;  %s236_s6 = scalar_lea.sflag [#allocation9], %s2017_s5 }
  0x5c   : > { %s2021_s21 = scalar_lea.vmem [#allocation8], %s1482_s11 }
  0x5d   : > { %1779 = dma.done.wait (%p3233_p7), %s236_s6, 16384  }
  0x5e   : > { %1781 = vsyncadd (%p3233_p7), %s236_s6, 4294950912  ;;  %s1483_s30 = sshll.u32 %s2017_s5, 5  ;;  %p1484_p5 = scmp.ne.s32.totalorder %s1804_s18, 0 }
  0x5f   : > { %s2028_s7 = scalar_lea.vmem [#allocation10], %s1483_s30  ;;  %v278_v0 = vld [vmem:[#allocation5] sm:$0xff] (!%p1484_p5)  ;;  %v279_v1 = vld [vmem:[#allocation5 + $0x8] sm:$0xff] (!%p1484_p5)  ;;  %v1819_v35 = vmov (!%p1484_p5), 683565275   ;;  %vm400_vm12 = vcmask (!%p1484_p5), 7168  }
  0x60   : > { %277 = sbr.rel (%p1484_p5) target bundleno = 347 (0x15b), region = 44  ;;  %v280_v2 = vmul.f32 (!%p1484_p5), %v278_v0, %v278_v0  ;;  %v281_v3 = vmul.f32 (!%p1484_p5), %v279_v1, %v279_v1  ;;  %v1820_v37 = vmov (!%p1484_p5), 2475754826   ;;  %v1821_v40 = vmov (!%p1484_p5), 2131351028  }
  0x61   : > { %v1822_v43 = vmov (!%p1484_p5), 2102212464   ;;  %v1823_v46 = vmov (!%p1484_p5), 920167782   ;;  %v1824_v49 = vmov (!%p1484_p5), 1326507024  }
  0x62   : > { %v282_v4 = vadd.f32 (!%p1484_p5), %v281_v3, %v280_v2 }
  0x64   : > { %283 = vadd.xlane.f32.xlu0 (!%p1484_p5), %v282_v4 }
  0xf1   : > { %v284_v5 = vpop.xlane.xlu0 %283 }
  0xf2   : > { %1606 = vrsqrt.f32 %v284_v5  ;;  %vm287_vm0 = vcmp.eq.f32.partialorder %v284_v5, inf  ;;  %v290_v8 = vand.u32 2147483648, %v284_v5  ;;  %vm289_vm1 = vcmp.eq.f32.partialorder %v284_v5, 0.0 }
  0xfc   : > { %v1607_v6 = vpop.eup %1606 }
  0xfd   : > { %v286_v7 = vmul.f32 %v1607_v6, %v284_v5 }
  0xff   : > { %v288_v9 = vsel %vm287_vm0, %v284_v5, %v286_v7 }
 0x100   : > { %v291_v10 = vsel %vm289_vm1, %v290_v8, %v288_v9 }
 0x101   : > { %v292_v11 = vmax.f32 %v291_v10, 10.0  ;;  %v507_v12 = vmax.f32 %v291_v10, 1e-12 }
 0x103   : > { %v293_v13 = vmin.f32 %v292_v11, 110.0  ;;  %1608 = vrcp.f32 %v507_v12 }
 0x105   : > { %v1485_v14 = vadd.f32 -10.0, %v293_v13  ;;  %1610 = vrcp.f32 %v293_v13  ;;  %v520_v22 = vmul.f32 8.264463e-05, %v293_v13 }
 0x107   : > { %v295_v15 = vmul.f32 0.0035, %v1485_v14 }
 0x109   : > { %v2031_v16 = vadd.f32 0.45, %v295_v15 }
 0x10b   : > { %v300_v17 = vand.u32 2139095040, %v2031_v16  ;;  %v297_v29 = vand.u32 2147483647, %v2031_v16  ;;  %vm299_vm9 = vcmp.lt.s32.totalorder %v2031_v16, 0 }
 0x10d   : > { %v1609_v18 = vpop.eup %1608  ;;  %v301_v19 = vshrl.u32 %v300_v17, 23  ;;  %v304_v32 = vand.u32 8388607, %v297_v29  ;;  %vm298_vm10 = vcmp.le.f32.partialorder %v297_v29, 0.7853982 }
 0x10e   : > { %v509_v20 = vmul.f32 %v1609_v18, %v278_v0  ;;  %v510_v21 = vmul.f32 %v1609_v18, %v279_v1 }
 0x10f   : > { %v1611_v23 = vpop.eup %1610  ;;  %v1486_v24 = vadd.s32 4294967169, %v301_v19  ;;  %v305_v51 = vor.u32 8388608, %v304_v32 }
 0x110   : > { %v1510_v25 = vpack.c.bf16 %v510_v21, %v509_v20  ;;  %v523_v26 = vadd.f32 %v1611_v23, %v520_v22 }
 0x111   : > { %v307_v27 = vadd.s32 1, %v1486_v24  ;;  %v345_v1 = vshll.u32 %v305_v51, 8 }
 0x112   : > { %519 = vst [vmem:[#allocation2] sm:$0xff] %v1510_v25  ;;  %v524_v28 = vmul.f32 20.0, %v523_v26 }
 0x113   : > { %vm308_vm2 = vcmp.gt.s32.totalorder %v307_v27, 0 }
 0x114   : > { %v309_v30 = vsel %vm308_vm2, %v307_v27, 0  ;;  %525 = vst [vmem:[#allocation11] sm:$0xff] %v524_v28  ;;  %vm389_vm2 = vweird.f32 %v2031_v16 }
 0x115   : > { %v311_v31 = vand.u32 31, %v309_v30  ;;  %v310_v34 = vshrl.u32 %v309_v30, 5 }
 0x117   : > { %v312_v33 = vsub.s32 32, %v311_v31  ;;  %v314_v36 = vshll.u32 %v1819_v35, %v311_v31  ;;  %v317_v38 = vshll.u32 %v1820_v37, %v311_v31  ;;  %v320_v42 = vshll.u32 %v1821_v40, %v311_v31 }
 0x118   : > { %v323_v45 = vshll.u32 %v1822_v43, %v311_v31  ;;  %v326_v48 = vshll.u32 %v1823_v46, %v311_v31  ;;  %vm329_vm3 = vcmp.lt.s32.totalorder %v310_v34, 1  ;;  %vm332_vm4 = vcmp.lt.s32.totalorder %v310_v34, 4 }
 0x119   : > { %v315_v39 = vshrl.u32 %v1820_v37, %v312_v33  ;;  %v318_v41 = vshrl.u32 %v1821_v40, %v312_v33  ;;  %v321_v44 = vshrl.u32 %v1822_v43, %v312_v33  ;;  %v324_v47 = vshrl.u32 %v1823_v46, %v312_v33 }
 0x11a   : > { %v327_v50 = vshrl.u32 %v1824_v49, %v312_v33  ;;  %v313_v60 = vshrl.u32 %v1819_v35, %v312_v33  ;;  %vm331_vm5 = vcmp.lt.s32.totalorder %v310_v34, 3  ;;  %vm330_vm6 = vcmp.lt.s32.totalorder %v310_v34, 2 }
 0x11b   : > { %v316_v52 = vor.u32 %v315_v39, %v314_v36  ;;  %v319_v53 = vor.u32 %v318_v41, %v317_v38  ;;  %v322_v54 = vor.u32 %v321_v44, %v320_v42  ;;  %v325_v55 = vor.u32 %v324_v47, %v323_v45 }
 0x11c   : > { %v328_v56 = vor.u32 %v327_v50, %v326_v48 }
 0x11d   : > { %v334_v57 = vsel %vm332_vm4, %v322_v54, 2102212464  ;;  %v337_v58 = vsel %vm329_vm3, %v316_v52, %v319_v53  ;;  %v341_v59 = vsel %vm329_vm3, %v319_v53, %v322_v54  ;;  %v338_v61 = vsel %vm332_vm4, %v325_v55, 920167782 }
 0x11e   : > { %v342_v62 = vsel %vm332_vm4, %v328_v56, 1326507024  ;;  %v339_v63 = vsel %vm331_vm5, %v322_v54, %v338_v61  ;;  %v333_v2 = vsel %vm329_vm3, %v313_v60, %v316_v52  ;;  %v335_v3 = vsel %vm331_vm5, %v319_v53, %v334_v57 }
 0x11f   : > { %v343_v0 = vsel %vm331_vm5, %v325_v55, %v342_v62  ;;  %v340_v4 = vsel %vm330_vm6, %v337_v58, %v339_v63  ;;  %v336_v10 = vsel %vm330_vm6, %v333_v2, %v335_v3 }
 0x120   : > { %v344_v5 = vsel %vm330_vm6, %v341_v59, %v343_v0  ;;  %v2040_v8 = vmul.u32.u64.low %v345_v1, %v340_v4  ;;  %v2041_v9 = vmul.u32.u64.high %v345_v1, %v340_v4, %v2040_v8  ;;  %v352_v12 = vmul.u32 %v345_v1, %v336_v10 }
 0x121   : > { %v2037_v6 = vmul.u32.u64.low %v345_v1, %v344_v5  ;;  %v2038_v7 = vmul.u32.u64.high %v345_v1, %v344_v5, %v2037_v6 }
 0x122   : > { %v355_v11 = vadd.s32 1, %v2041_v9 }
 0x123   : > { %vm354_vm7 = vc.u32 %v2038_v7, %v2040_v8  ;;  %v353_v25 = vadd.s32 %v2040_v8, %v2038_v7 }
 0x124   : > { %v356_v13 = vsel %vm354_vm7, %v355_v11, %v2041_v9 }
 0x125   : > { %v357_v14 = vadd.s32 %v356_v13, %v352_v12 }
 0x127   : > { %v358_v15 = vadd.s32 536870912, %v357_v14 }
 0x129   : > { %v359_v17 = vshrl.u32 %v358_v15, 30 }
 0x12b   : > { %v360_v18 = vshll.u32 %v359_v17, 30  ;;  %v383_v38 = vsub.s32 4, %v359_v17 }
 0x12d   : > { %v361_v19 = vsub.s32 %v357_v14, %v360_v18  ;;  %v384_v41 = vsel %vm299_vm9, %v383_v38, %v359_v17 }
 0x12e   : > { %v386_v43 = vsel %vm298_vm10, 0, %v384_v41 }
 0x12f   : > { %v363_v20 = vsub.s32 0, %v361_v19  ;;  %v495_v44 = vadd.s32 3, %v386_v43  ;;  %v390_v45 = vand.u32 3, %v386_v43 }
 0x131   : > { %v1487_v21 = vmin.u32 %v363_v20, %v361_v19  ;;  %v496_v46 = vand.u32 3, %v495_v44  ;;  %vm395_vm11 = vcmp.eq.s32.totalorder %v390_v45, 2  ;;  %vm392_vm14 = vcmp.eq.s32.totalorder %v390_v45, 0 }
 0x132   : > { %vm391_vm0 = vcmp.lt.s32.totalorder %v390_v45, 2 }
 0x133   : > { %v365_v22 = vclz %v1487_v21  ;;  %vm501_vm13 = vcmp.eq.s32.totalorder %v496_v46, 2  ;;  %vm498_vm15 = vcmp.eq.s32.totalorder %v496_v46, 0  ;;  %vm497_vm1 = vcmp.lt.s32.totalorder %v496_v46, 2 }
 0x135   : > { %v1488_v23 = vadd.s32 4294967294, %v365_v22 }
 0x137   : > { %vm1489_vm8 = vcmp.lt.s32.totalorder %v1488_v23, 0 }
 0x138   : > { %v368_v24 = vsel %vm1489_vm8, 0, %v1488_v23 }
 0x139   : > { %v369_v26 = vsub.s32 32, %v368_v24  ;;  %v373_v27 = vsub.s32 4294967266, %v368_v24  ;;  %v370_v28 = vshll.u32 %v361_v19, %v368_v24 }
 0x13b   : > { %v371_v30 = vshrl.u32 %v353_v25, %v369_v26  ;;  %v374_v31 = vadd.s32 127, %v373_v27 }
 0x13d   : > { %v372_v32 = vor.u32 %v371_v30, %v370_v28  ;;  %v375_v33 = vshll.u32 %v374_v31, 23 }
 0x13f   : > { %v376_v34 = vor.u32 4788187, %v375_v33  ;;  %v379_v36 = vcvt.s32.f32 %v372_v32 }
 0x141   : > { %v377_v35 = vand.u32 2147483647, %v376_v34 }
 0x143   : > { %v380_v37 = vmul.f32 %v379_v36, %v377_v35 }
 0x145   : > { %v381_v39 = vxor.u32 2147483648, %v380_v37 }
 0x147   : > { %v382_v40 = vsel %vm299_vm9, %v381_v39, %v380_v37 }
 0x148   : > { %v385_v42 = vsel %vm298_vm10, %v2031_v16, %v382_v40 }
 0x149   : > { %1612 = vcosq.f32 %v385_v42 }
 0x14a   : > { %1614 = vsinq.f32 %v385_v42 }
 0x153   : > { %v1613_v47 = vpop.eup %1612 }
 0x154   : > { %v1615_v48 = vpop.eup %1614  ;;  %v396_v49 = vxor.u32 2147483648, %v1613_v47 }
 0x155   : > { %v393_v50 = vxor.u32 2147483648, %v1615_v48 }
 0x156   : > { %v397_v51 = vsel %vm395_vm11, %v396_v49, %v1615_v48  ;;  %v503_v29 = vsel %vm501_vm13, %v396_v49, %v1615_v48 }
 0x157   : > { %v394_v52 = vsel %vm392_vm14, %v1613_v47, %v393_v50  ;;  %v500_v53 = vsel %vm498_vm15, %v1613_v47, %v393_v50 }
 0x158   : > { %v398_v54 = vsel %vm391_vm0, %v394_v52, %v397_v51  ;;  %v504_v55 = vsel %vm497_vm1, %v500_v53, %v503_v29 }
 0x159   : > { %v399_v56 = vsel %vm389_vm2, nan, %v398_v54  ;;  %v505_v57 = vsel %vm389_vm2, nan, %v504_v55 }
 0x15a   : > { %401 = vst.msk [vmem:[#allocation3] sm:$0xff] %vm400_vm12, %v399_v56  ;;  %506 = vst.msk [vmem:[#allocation4] sm:$0xff] %vm400_vm12, %v505_v57 }
 0x15b PF: > { %v2055_v58 = vld [vmem:[%s2021_s21 + $0x8] sm:$0xff]  ;;  %v2096_v13 = vld [vmem:[%s2021_s21 + $0x18] sm:$0xff]  ;;  %s1501_s26 = sshll.u32 %s1804_s18, 9  ;;  %s1826_s12 = smov [#allocation11]  }
 0x15c   : > { %v2058_v16 = vld [vmem:[%s2021_s21 + $0x28] sm:$0xff]  ;;  %v655_v61 = vmul.f32 %v2055_v58, %v2055_v58  ;;  %v2101_v17 = vld [vmem:[%s2021_s21 + $0x38] sm:$0xff]  ;;  %v657_v20 = vmul.f32 %v2096_v13, %v2096_v13  ;;  %s1348_s13 = sshll.u32 %s1826_s12, 4  ;;  %p3406_p11 = scmp.ne.s32.totalorder %s3219_s25, 0  ;;  %s1349_s13 = int_to_ptr.vmem [resolvable:$true] %s1348_s13 }
 0x15d   : > { %v2061_v59 = vld [vmem:[%s2021_s21 + $0x48] sm:$0xff]  ;;  %v659_v62 = vmul.f32 %v2058_v16, %v2058_v16  ;;  %v2104_v18 = vld [vmem:[%s2021_s21 + $0x58] sm:$0xff]  ;;  %v661_v22 = vmul.f32 %v2101_v17, %v2101_v17  ;;  %s1696_s8 = scalar_lea.vmem %s1349_s13, 128  ;;  %p1703_p9 = scmp.lt.s32.totalorder %s1349_s13, %s1349_s13 }
 0x15e   : > { %v2064_v60 = vld [vmem:[%s2021_s21 + $0x68] sm:$0xff]  ;;  %v663_v63 = vmul.f32 %v2061_v59, %v2061_v59  ;;  %v2107_v19 = vld [vmem:[%s2021_s21 + $0x78] sm:$0xff]  ;;  %v665_v23 = vmul.f32 %v2104_v18, %v2104_v18  ;;  %p1697_p10 = scmp.ne.s32.totalorder %s1349_s13, %s1696_s8  ;;  %p1704_p3 = scmp.lt.s32.totalorder %s1696_s8, %s1696_s8 }
 0x15f   : > { %v2073_v0 = vld [vmem:[%s2021_s21 + $0x88] sm:$0xff]  ;;  %v667_v1 = vmul.f32 %v2064_v60, %v2064_v60  ;;  %v819_v2 = vadd.f32 %v659_v62, %v655_v61  ;;  %v2121_v26 = vld [vmem:[%s2021_s21 + $0x98] sm:$0xff]  ;;  %v669_v28 = vmul.f32 %v2107_v19, %v2107_v19  ;;  %v893_v30 = vadd.f32 %v661_v22, %v657_v20 }
 0x160   : > { %v2078_v3 = vld [vmem:[%s2021_s21 + $0xa8] sm:$0xff]  ;;  %v671_v4 = vmul.f32 %v2073_v0, %v2073_v0  ;;  %v2131_v33 = vld [vmem:[%s2021_s21 + $0xb8] sm:$0xff]  ;;  %v673_v35 = vmul.f32 %v2121_v26, %v2121_v26  ;;  %p1698_p1 = pnand %p1697_p10, %p3406_p11  ;;  %p1705_p4 = por %p1704_p3, %p1703_p9 }
 0x161   : > { %v820_v5 = vadd.f32 %v819_v2, %v663_v63  ;;  %v2083_v6 = vld [vmem:[%s2021_s21 + $0xc8] sm:$0xff]  ;;  %v675_v7 = vmul.f32 %v2078_v3, %v2078_v3  ;;  %v894_v36 = vadd.f32 %v893_v30, %v665_v23  ;;  %v2141_v39 = vld [vmem:[%s2021_s21 + $0xd8] sm:$0xff]  ;;  %v677_v41 = vmul.f32 %v2131_v33, %v2131_v33 }
 0x162   : > { %v2088_v9 = vld [vmem:[%s2021_s21 + $0xe8] sm:$0xff]  ;;  %v679_v10 = vmul.f32 %v2083_v6, %v2083_v6  ;;  %3234 = vst [vmem:[#allocation17_spill] sm:$0xff] %v2141_v39  ;;  %v2151_v45 = vld [vmem:[%s2021_s21 + $0xf8] sm:$0xff]  ;;  %v681_v47 = vmul.f32 %v2141_v39, %v2141_v39  ;;  %v2403_v39 = vld [vmem:[%s2021_s21 + $0x1a0] sm:$0xff]  ;;  %p1699_p0 = pneg %p1698_p1 }
 0x163   : > { %v821_v8 = vadd.f32 %v820_v5, %v667_v1  ;;  %v2093_v12 = vld [vmem:[%s2021_s21 + $0x108] sm:$0xff]  ;;  %v683_v14 = vmul.f32 %v2088_v9, %v2088_v9  ;;  %v895_v42 = vadd.f32 %v894_v36, %v669_v28  ;;  %3235 = vst [vmem:[#allocation18_spill] sm:$0xff] %v2151_v45  ;;  %v2161_v51 = vld [vmem:[%s2021_s21 + $0x118] sm:$0xff]  ;;  %v685_v52 = vmul.f32 %v2151_v45, %v2151_v45 }
 0x164   : > { %v2112_v21 = vld [vmem:[%s2021_s21 + $0x128] sm:$0xff]  ;;  %v687_v24 = vmul.f32 %v2093_v12, %v2093_v12  ;;  %3236 = vst [vmem:[#allocation19_spill] sm:$0xff] %v2161_v51  ;;  %v2171_v56 = vld [vmem:[%s2021_s21 + $0x138] sm:$0xff]  ;;  %v689_v61 = vmul.f32 %v2161_v51, %v2161_v51  ;;  %v2363_v51 = vld [vmem:[%s2021_s21 + $0x160] sm:$0xff]  ;;  %p1706_p12 = pnand %p1705_p4, %p1699_p0 }
 0x165   : > { %v822_v11 = vadd.f32 %v821_v8, %v671_v4  ;;  %v2124_v27 = vld [vmem:[%s2021_s21 + $0x148] sm:$0xff]  ;;  %v691_v31 = vmul.f32 %v2112_v21, %v2112_v21  ;;  %v896_v48 = vadd.f32 %v895_v42, %v673_v35  ;;  %3238 = vst [vmem:[#allocation21_spill] sm:$0xff] %v2171_v56  ;;  %v2181_v2 = vld [vmem:[%s2021_s21 + $0x158] sm:$0xff]  ;;  %v693_v5 = vmul.f32 %v2171_v56, %v2171_v56  ;;  %v2189_v8 = vld [vmem:[%s2021_s21] sm:$0xff] }
 0x166   : > { %v2134_v34 = vld [vmem:[%s2021_s21 + $0x168] sm:$0xff]  ;;  %v695_v37 = vmul.f32 %v2124_v27, %v2124_v27  ;;  %3240 = vst [vmem:[#allocation23_spill] sm:$0xff] %v2181_v2  ;;  %v697_v22 = vmul.f32 %v2181_v2, %v2181_v2  ;;  %v2210_v30 = vld [vmem:[%s2021_s21 + $0x198] sm:$0xff]  ;;  %3263 = vst [vmem:[#allocation46_spill] sm:$0xff] %v2363_v51  ;;  %v698_v45 = vmul.f32 %v2363_v51, %v2363_v51 }
 0x167   : > { %v823_v15 = vadd.f32 %v822_v11, %v675_v7  ;;  %v2144_v40 = vld [vmem:[%s2021_s21 + $0x188] sm:$0xff]  ;;  %v699_v43 = vmul.f32 %v2134_v34, %v2134_v34  ;;  %v897_v53 = vadd.f32 %v896_v48, %v677_v41  ;;  %3244 = vst [vmem:[#allocation27_spill] sm:$0xff] %v2210_v30  ;;  %v705_v48 = vmul.f32 %v2210_v30, %v2210_v30  ;;  %v2313_v30 = vld [vmem:[%s2021_s21 + $0x50] sm:$0xff] }
 0x168   : > { %v2154_v46 = vld [vmem:[%s2021_s21 + $0x1a8] sm:$0xff]  ;;  %v703_v49 = vmul.f32 %v2144_v40, %v2144_v40  ;;  %3271 = vst [vmem:[#allocation54_spill] sm:$0xff] %v2403_v39 }
 0x169   : > { %v824_v25 = vadd.f32 %v823_v15, %v679_v10  ;;  %v2164_v29 = vld [vmem:[%s2021_s21 + $0x1c8] sm:$0xff]  ;;  %v707_v54 = vmul.f32 %v2154_v46, %v2154_v46  ;;  %v898_v62 = vadd.f32 %v897_v53, %v681_v47  ;;  %v2192_v10 = vld [vmem:[%s2021_s21 + $0x20] sm:$0xff]  ;;  %v2197_v15 = vld [vmem:[%s2021_s21 + $0x178] sm:$0xff] }
 0x16a   : > { %3237 = vst [vmem:[#allocation20_spill] sm:$0xff] %v2164_v29  ;;  %v2174_v57 = vld [vmem:[%s2021_s21 + $0x1e8] sm:$0xff]  ;;  %v711_v63 = vmul.f32 %v2164_v29, %v2164_v29  ;;  %3242 = vst [vmem:[#allocation25_spill] sm:$0xff] %v2197_v15  ;;  %v701_v36 = vmul.f32 %v2197_v15, %v2197_v15  ;;  %v2383_v29 = vld [vmem:[%s2021_s21 + $0x180] sm:$0xff] }
 0x16b   : > { %v825_v32 = vadd.f32 %v824_v25, %v683_v14  ;;  %3239 = vst [vmem:[#allocation22_spill] sm:$0xff] %v2174_v57  ;;  %v2184_v4 = vld [vmem:[%s2021_s21 + $0x208] sm:$0xff]  ;;  %v899_v7 = vadd.f32 %v898_v62, %v685_v52  ;;  %v715_v11 = vmul.f32 %v2174_v57, %v2174_v57  ;;  %3267 = vst [vmem:[#allocation50_spill] sm:$0xff] %v2383_v29 }
 0x16c   : > { %3241 = vst [vmem:[#allocation24_spill] sm:$0xff] %v2184_v4  ;;  %v2200_v20 = vld [vmem:[%s2021_s21 + $0x228] sm:$0xff]  ;;  %v719_v25 = vmul.f32 %v2184_v4, %v2184_v4 }
 0x16d   : > { %v826_v38 = vadd.f32 %v825_v32, %v687_v24  ;;  %3243 = vst [vmem:[#allocation26_spill] sm:$0xff] %v2200_v20  ;;  %v900_v23 = vadd.f32 %v899_v7, %v689_v61  ;;  %v2205_v24 = vld [vmem:[%s2021_s21 + $0x40] sm:$0xff]  ;;  %v658_v32 = vmul.f32 %v2192_v10, %v2192_v10  ;;  %v2217_v35 = vld [vmem:[%s2021_s21 + $0x248] sm:$0xff]  ;;  %v723_v41 = vmul.f32 %v2200_v20, %v2200_v20 }
 0x16e   : > { %3245 = vst [vmem:[#allocation28_spill] sm:$0xff] %v2217_v35  ;;  %v2232_v47 = vld [vmem:[%s2021_s21 + $0x268] sm:$0xff]  ;;  %v727_v52 = vmul.f32 %v2217_v35, %v2217_v35  ;;  %v2343_v20 = vld [vmem:[%s2021_s21 + $0x140] sm:$0xff] }
 0x16f   : > { %v827_v44 = vadd.f32 %v826_v38, %v691_v31  ;;  %v654_v31 = vmul.f32 %v2189_v8, %v2189_v8  ;;  %v2222_v38 = vld [vmem:[%s2021_s21 + $0x60] sm:$0xff]  ;;  %3247 = vst [vmem:[#allocation30_spill] sm:$0xff] %v2232_v47  ;;  %v2247_v62 = vld [vmem:[%s2021_s21 + $0x288] sm:$0xff]  ;;  %v731_v7 = vmul.f32 %v2232_v47, %v2232_v47  ;;  %v694_v57 = vmul.f32 %v2343_v20, %v2343_v20 }
 0x170   : > { %3249 = vst [vmem:[#allocation32_spill] sm:$0xff] %v2247_v62  ;;  %v2321_v47 = vld [vmem:[%s2021_s21 + $0x120] sm:$0xff]  ;;  %v2338_v35 = vld [vmem:[%s2021_s21 + $0x328] sm:$0xff] }
 0x171   : > { %v828_v50 = vadd.f32 %v827_v44, %v695_v37  ;;  %v901_v37 = vadd.f32 %v900_v23, %v693_v5  ;;  %v662_v44 = vmul.f32 %v2205_v24, %v2205_v24  ;;  %v782_v61 = vadd.f32 %v658_v32, %v654_v31  ;;  %v2252_v5 = vld [vmem:[%s2021_s21 + $0xa0] sm:$0xff]  ;;  %3259 = vst [vmem:[#allocation42_spill] sm:$0xff] %v2338_v35 }
 0x172   : > { %v2267_v32 = vld [vmem:[%s2021_s21 + $0xc0] sm:$0xff] }
 0x173   : > { %v829_v55 = vadd.f32 %v828_v50, %v699_v43  ;;  %v2227_v43 = vld [vmem:[%s2021_s21 + $0x1b8] sm:$0xff]  ;;  %v2237_v50 = vld [vmem:[%s2021_s21 + $0x80] sm:$0xff]  ;;  %v783_v23 = vadd.f32 %v782_v61, %v662_v44 }
 0x174   : > { %3246 = vst [vmem:[#allocation29_spill] sm:$0xff] %v2227_v43  ;;  %v2282_v61 = vld [vmem:[%s2021_s21 + $0xe0] sm:$0xff] }
 0x175   : > { %v830_v1 = vadd.f32 %v829_v55, %v703_v49  ;;  %v902_v49 = vadd.f32 %v901_v37, %v697_v22  ;;  %v666_v55 = vmul.f32 %v2222_v38, %v2222_v38  ;;  %v670_v22 = vmul.f32 %v2237_v50, %v2237_v50 }
 0x177   : > { %v831_v14 = vadd.f32 %v830_v1, %v707_v54  ;;  %v2242_v54 = vld [vmem:[%s2021_s21 + $0x1d8] sm:$0xff]  ;;  %v903_v1 = vadd.f32 %v902_v49, %v701_v36  ;;  %v735_v36 = vmul.f32 %v2247_v62, %v2247_v62  ;;  %v784_v44 = vadd.f32 %v783_v23, %v666_v55  ;;  %v2277_v49 = vld [vmem:[%s2021_s21 + $0x2c8] sm:$0xff] }
 0x178   : > { %3248 = vst [vmem:[#allocation31_spill] sm:$0xff] %v2242_v54  ;;  %3253 = vst [vmem:[#allocation36_spill] sm:$0xff] %v2277_v49  ;;  %v678_v55 = vmul.f32 %v2267_v32, %v2267_v32 }
 0x179   : > { %v832_v28 = vadd.f32 %v831_v14, %v711_v63  ;;  %v709_v63 = vmul.f32 %v2227_v43, %v2227_v43  ;;  %v2257_v14 = vld [vmem:[%s2021_s21 + $0x1f8] sm:$0xff]  ;;  %v904_v31 = vadd.f32 %v903_v1, %v705_v48  ;;  %v785_v23 = vadd.f32 %v784_v44, %v670_v22 }
 0x17a   : > { %3250 = vst [vmem:[#allocation33_spill] sm:$0xff] %v2257_v14  ;;  %v717_v48 = vmul.f32 %v2257_v14, %v2257_v14  ;;  %v2295_v14 = vld [vmem:[%s2021_s21 + $0x30] sm:$0xff]  ;;  %v2308_v22 = vld [vmem:[%s2021_s21 + $0x258] sm:$0xff]  ;;  %v682_v44 = vmul.f32 %v2282_v61, %v2282_v61 }
 0x17b   : > { %v833_v42 = vadd.f32 %v832_v28, %v715_v11  ;;  %v713_v28 = vmul.f32 %v2242_v54, %v2242_v54  ;;  %v2292_v54 = vld [vmem:[%s2021_s21 + $0x10] sm:$0xff]  ;;  %3256 = vst [vmem:[#allocation39_spill] sm:$0xff] %v2308_v22  ;;  %v729_v15 = vmul.f32 %v2308_v22, %v2308_v22 }
 0x17c   : > { %v2355_v22 = vld [vmem:[%s2021_s21 + $0x90] sm:$0xff] }
 0x17d   : > { %v834_v53 = vadd.f32 %v833_v42, %v719_v25  ;;  %v2262_v25 = vld [vmem:[%s2021_s21 + $0x2a8] sm:$0xff]  ;;  %v674_v42 = vmul.f32 %v2252_v5, %v2252_v5  ;;  %3261 = vst [vmem:[#allocation44_spill] sm:$0xff] %v2355_v22 }
 0x17e   : > { %3251 = vst [vmem:[#allocation34_spill] sm:$0xff] %v2262_v25  ;;  %v739_v1 = vmul.f32 %v2262_v25, %v2262_v25 }
 0x17f   : > { %v835_v11 = vadd.f32 %v834_v53, %v723_v41  ;;  %v2272_v41 = vld [vmem:[%s2021_s21 + $0x218] sm:$0xff]  ;;  %v905_v53 = vadd.f32 %v904_v31, %v709_v63  ;;  %v2298_v63 = vld [vmem:[%s2021_s21 + $0x2e8] sm:$0xff]  ;;  %v786_v43 = vadd.f32 %v785_v23, %v674_v42 }
 0x180   : > { %3252 = vst [vmem:[#allocation35_spill] sm:$0xff] %v2272_v41  ;;  %3255 = vst [vmem:[#allocation38_spill] sm:$0xff] %v2298_v63  ;;  %v721_v31 = vmul.f32 %v2272_v41, %v2272_v41  ;;  %v2316_v41 = vld [vmem:[%s2021_s21 + $0x308] sm:$0xff]  ;;  %v747_v42 = vmul.f32 %v2298_v63, %v2298_v63 }
 0x181   : > { %v836_v37 = vadd.f32 %v835_v11, %v727_v52  ;;  %v2287_v11 = vld [vmem:[%s2021_s21 + $0x238] sm:$0xff]  ;;  %v906_v25 = vadd.f32 %v905_v53, %v713_v28  ;;  %3257 = vst [vmem:[#allocation40_spill] sm:$0xff] %v2316_v41 }
 0x182   : > { %3254 = vst [vmem:[#allocation37_spill] sm:$0xff] %v2287_v11  ;;  %v725_v28 = vmul.f32 %v2287_v11, %v2287_v11  ;;  %v2335_v11 = vld [vmem:[%s2021_s21 + $0x70] sm:$0xff] }
 0x183   : > { %v837_v52 = vadd.f32 %v836_v37, %v731_v7  ;;  %v2303_v7 = vld [vmem:[%s2021_s21 + $0x100] sm:$0xff]  ;;  %v743_v37 = vmul.f32 %v2277_v49, %v2277_v49  ;;  %v907_v53 = vadd.f32 %v906_v25, %v717_v48  ;;  %v2330_v49 = vld [vmem:[%s2021_s21 + $0x278] sm:$0xff]  ;;  %v787_v48 = vadd.f32 %v786_v43, %v678_v55 }
 0x184   : > { %3258 = vst [vmem:[#allocation41_spill] sm:$0xff] %v2330_v49  ;;  %v686_v25 = vmul.f32 %v2303_v7, %v2303_v7  ;;  %v2350_v43 = vld [vmem:[%s2021_s21 + $0x298] sm:$0xff]  ;;  %v690_v55 = vmul.f32 %v2321_v47, %v2321_v47 }
 0x185   : > { %v838_v62 = vadd.f32 %v837_v52, %v735_v36  ;;  %v656_v36 = vmul.f32 %v2292_v54, %v2292_v54  ;;  %v660_v52 = vmul.f32 %v2295_v14, %v2295_v14  ;;  %v908_v2 = vadd.f32 %v907_v53, %v721_v31  ;;  %3260 = vst [vmem:[#allocation43_spill] sm:$0xff] %v2350_v43  ;;  %v2358_v31 = vld [vmem:[%s2021_s21 + $0x348] sm:$0xff] }
 0x186   : > { %v788_v4 = vadd.f32 %v787_v48, %v682_v44  ;;  %3262 = vst [vmem:[#allocation45_spill] sm:$0xff] %v2358_v31  ;;  %v733_v53 = vmul.f32 %v2330_v49, %v2330_v49  ;;  %v2370_v48 = vld [vmem:[%s2021_s21 + $0x2b8] sm:$0xff] }
 0x187   : > { %v839_v23 = vadd.f32 %v838_v62, %v739_v1  ;;  %v664_v62 = vmul.f32 %v2313_v30, %v2313_v30  ;;  %v751_v1 = vmul.f32 %v2316_v41, %v2316_v41  ;;  %v909_v56 = vadd.f32 %v908_v2, %v725_v28  ;;  %3264 = vst [vmem:[#allocation47_spill] sm:$0xff] %v2370_v48  ;;  %v2375_v2 = vld [vmem:[%s2021_s21 + $0xb0] sm:$0xff]  ;;  %v2378_v28 = vld [vmem:[%s2021_s21 + $0x368] sm:$0xff] }
 0x188   : > { %v755_v41 = vmul.f32 %v2338_v35, %v2338_v35  ;;  %v789_v49 = vadd.f32 %v788_v4, %v686_v25  ;;  %3265 = vst [vmem:[#allocation48_spill] sm:$0xff] %v2375_v2  ;;  %3266 = vst [vmem:[#allocation49_spill] sm:$0xff] %v2378_v28  ;;  %v759_v35 = vmul.f32 %v2358_v31, %v2358_v31  ;;  %v2390_v25 = vld [vmem:[%s2021_s21 + $0x2d8] sm:$0xff] }
 0x189   : > { %v840_v63 = vadd.f32 %v839_v23, %v743_v37  ;;  %v668_v37 = vmul.f32 %v2335_v11, %v2335_v11  ;;  %v856_v23 = vadd.f32 %v660_v52, %v656_v36  ;;  %v737_v36 = vmul.f32 %v2350_v43, %v2350_v43  ;;  %3268 = vst [vmem:[#allocation51_spill] sm:$0xff] %v2390_v25 }
 0x18a   : > { %v910_v52 = vadd.f32 %v909_v56, %v729_v15  ;;  %v790_v43 = vadd.f32 %v789_v49, %v690_v55  ;;  %v2395_v56 = vld [vmem:[%s2021_s21 + $0xd0] sm:$0xff]  ;;  %v2398_v15 = vld [vmem:[%s2021_s21 + $0x388] sm:$0xff]  ;;  %v763_v31 = vmul.f32 %v2378_v28, %v2378_v28  ;;  %v2410_v55 = vld [vmem:[%s2021_s21 + $0x2f8] sm:$0xff] }
 0x18b   : > { %v841_v44 = vadd.f32 %v840_v63, %v747_v42  ;;  %v672_v63 = vmul.f32 %v2355_v22, %v2355_v22  ;;  %v857_v42 = vadd.f32 %v856_v23, %v664_v62  ;;  %3269 = vst [vmem:[#allocation52_spill] sm:$0xff] %v2395_v56  ;;  %3270 = vst [vmem:[#allocation53_spill] sm:$0xff] %v2398_v15 }
 0x18c   : > { %v741_v62 = vmul.f32 %v2370_v48, %v2370_v48  ;;  %v911_v23 = vadd.f32 %v910_v52, %v733_v53  ;;  %3272 = vst [vmem:[#allocation55_spill] sm:$0xff] %v2410_v55  ;;  %v702_v22 = vmul.f32 %v2383_v29, %v2383_v29  ;;  %v791_v48 = vadd.f32 %v790_v43, %v694_v57  ;;  %v2415_v53 = vld [vmem:[%s2021_s21 + $0xf0] sm:$0xff]  ;;  %v2418_v52 = vld [vmem:[%s2021_s21 + $0x3a8] sm:$0xff]  ;;  %v2430_v43 = vld [vmem:[%s2021_s21 + $0x318] sm:$0xff] }
 0x18d   : > { %v842_v4 = vadd.f32 %v841_v44, %v751_v1  ;;  %v676_v1 = vmul.f32 %v2375_v2, %v2375_v2  ;;  %v858_v44 = vadd.f32 %v857_v42, %v668_v37  ;;  %3273 = vst [vmem:[#allocation56_spill] sm:$0xff] %v2415_v53  ;;  %3274 = vst [vmem:[#allocation57_spill] sm:$0xff] %v2418_v52  ;;  %v2423_v2 = vld [vmem:[%s2021_s21 + $0x1c0] sm:$0xff] }
 0x18e   : > { %v745_v37 = vmul.f32 %v2390_v25, %v2390_v25  ;;  %v912_v42 = vadd.f32 %v911_v23, %v737_v36  ;;  %3275 = vst [vmem:[#allocation58_spill] sm:$0xff] %v2423_v2  ;;  %v767_v28 = vmul.f32 %v2398_v15, %v2398_v15  ;;  %3276 = vst [vmem:[#allocation59_spill] sm:$0xff] %v2430_v43  ;;  %v2435_v36 = vld [vmem:[%s2021_s21 + $0x110] sm:$0xff]  ;;  %v2438_v23 = vld [vmem:[%s2021_s21 + $0x3c8] sm:$0xff] }
 0x18f   : > { %v843_v49 = vadd.f32 %v842_v4, %v755_v41  ;;  %v680_v41 = vmul.f32 %v2395_v56, %v2395_v56  ;;  %v859_v4 = vadd.f32 %v858_v44, %v672_v63  ;;  %v706_v29 = vmul.f32 %v2403_v39, %v2403_v39  ;;  %3277 = vst [vmem:[#allocation60_spill] sm:$0xff] %v2435_v36  ;;  %v2443_v56 = vld [vmem:[%s2021_s21 + $0x1e0] sm:$0xff] }
 0x190   : > { %v792_v25 = vadd.f32 %v791_v48, %v698_v45  ;;  %3278 = vst [vmem:[#allocation61_spill] sm:$0xff] %v2438_v23  ;;  %v749_v63 = vmul.f32 %v2410_v55, %v2410_v55  ;;  %v913_v44 = vadd.f32 %v912_v42, %v741_v62  ;;  %v771_v15 = vmul.f32 %v2418_v52, %v2418_v52  ;;  %v2450_v48 = vld [vmem:[%s2021_s21 + $0x338] sm:$0xff]  ;;  %v2455_v62 = vld [vmem:[%s2021_s21 + $0x130] sm:$0xff]  ;;  %v2458_v42 = vld [vmem:[%s2021_s21 + $0x3e8] sm:$0xff] }
 0x191   : > { %v844_v57 = vadd.f32 %v843_v49, %v759_v35  ;;  %v684_v35 = vmul.f32 %v2415_v53, %v2415_v53  ;;  %v860_v49 = vadd.f32 %v859_v4, %v676_v1  ;;  %3279 = vst [vmem:[#allocation62_spill] sm:$0xff] %v2450_v48  ;;  %v710_v39 = vmul.f32 %v2423_v2, %v2423_v2  ;;  %v2463_v4 = vld [vmem:[%s2021_s21 + $0x200] sm:$0xff] }
 0x192   : > { %v793_v51 = vadd.f32 %v792_v25, %v702_v22  ;;  %3280 = vst [vmem:[#allocation63_spill] sm:$0xff] %v2458_v42  ;;  %v753_v55 = vmul.f32 %v2430_v43, %v2430_v43  ;;  %v914_v1 = vadd.f32 %v913_v44, %v745_v37  ;;  %3281 = vst [vmem:[#allocation64_spill] sm:$0xff] %v2463_v4  ;;  %v2470_v25 = vld [vmem:[%s2021_s21 + $0x358] sm:$0xff]  ;;  %v2475_v37 = vld [vmem:[%s2021_s21 + $0x150] sm:$0xff] }
 0x193   : > { %v845_v45 = vadd.f32 %v844_v57, %v763_v31  ;;  %v688_v31 = vmul.f32 %v2435_v36, %v2435_v36  ;;  %v861_v57 = vadd.f32 %v860_v49, %v680_v41  ;;  %v775_v52 = vmul.f32 %v2438_v23, %v2438_v23  ;;  %3282 = vst [vmem:[#allocation65_spill] sm:$0xff] %v2470_v25  ;;  %v2480_v41 = vld [vmem:[%s2021_s21 + $0x220] sm:$0xff]  ;;  %v2487_v36 = vld [vmem:[%s2021_s21 + $0x378] sm:$0xff] }
 0x194   : > { %v714_v2 = vmul.f32 %v2443_v56, %v2443_v56  ;;  %v794_v43 = vadd.f32 %v793_v51, %v706_v29  ;;  %3283 = vst [vmem:[#allocation66_spill] sm:$0xff] %v2475_v37  ;;  %v757_v44 = vmul.f32 %v2450_v48, %v2450_v48  ;;  %v915_v53 = vadd.f32 %v914_v1, %v749_v63  ;;  %v2492_v63 = vld [vmem:[%s2021_s21 + $0x170] sm:$0xff] }
 0x195   : > { %v846_v22 = vadd.f32 %v845_v45, %v767_v28  ;;  %v692_v49 = vmul.f32 %v2455_v62, %v2455_v62  ;;  %v862_v28 = vadd.f32 %v861_v57, %v684_v35  ;;  %v779_v45 = vmul.f32 %v2458_v42, %v2458_v42  ;;  %3284 = vst [vmem:[#allocation67_spill] sm:$0xff] %v2487_v36  ;;  %v2497_v35 = vld [vmem:[%s2021_s21 + $0x240] sm:$0xff]  ;;  %v2502_v42 = vld [vmem:[%s2021_s21 + $0x398] sm:$0xff] }
 0x196   : > { %v718_v51 = vmul.f32 %v2463_v4, %v2463_v4  ;;  %v795_v29 = vadd.f32 %v794_v43, %v710_v39  ;;  %3285 = vst [vmem:[#allocation68_spill] sm:$0xff] %v2492_v63  ;;  %v761_v1 = vmul.f32 %v2470_v25, %v2470_v25  ;;  %v916_v48 = vadd.f32 %v915_v53, %v753_v55  ;;  %v2507_v4 = vld [vmem:[%s2021_s21 + $0x190] sm:$0xff]  ;;  %v2512_v25 = vld [vmem:[%s2021_s21 + $0x260] sm:$0xff] }
 0x197   : > { %v847_v23 = vadd.f32 %v846_v22, %v771_v15  ;;  %3286 = vst [vmem:[#allocation69_spill] sm:$0xff] %v2497_v35  ;;  %v696_v57 = vmul.f32 %v2475_v37, %v2475_v37  ;;  %v863_v15 = vadd.f32 %v862_v28, %v688_v31  ;;  %3287 = vst [vmem:[#allocation70_spill] sm:$0xff] %v2502_v42  ;;  %v2517_v28 = vld [vmem:[%s2021_s21 + $0x3b8] sm:$0xff]  ;;  %v2522_v37 = vld [vmem:[%s2021_s21 + $0x1b0] sm:$0xff] }
 0x198   : > { %v722_v39 = vmul.f32 %v2480_v41, %v2480_v41  ;;  %v796_v43 = vadd.f32 %v795_v29, %v714_v2  ;;  %3288 = vst [vmem:[#allocation71_spill] sm:$0xff] %v2507_v4  ;;  %v765_v55 = vmul.f32 %v2487_v36, %v2487_v36  ;;  %v917_v53 = vadd.f32 %v916_v48, %v757_v44  ;;  %v2527_v36 = vld [vmem:[%s2021_s21 + $0x280] sm:$0xff] }
 0x199   : > { %v848_v22 = vadd.f32 %v847_v23, %v775_v52  ;;  %3289 = vst [vmem:[#allocation72_spill] sm:$0xff] %v2512_v25  ;;  %v700_v31 = vmul.f32 %v2492_v63, %v2492_v63  ;;  %v864_v52 = vadd.f32 %v863_v15, %v692_v49  ;;  %3290 = vst [vmem:[#allocation73_spill] sm:$0xff] %v2517_v28  ;;  %v2547_v63 = vld [vmem:[%s2021_s21 + $0x3f8] sm:$0xff] }
 0x19a   : > { %v726_v2 = vmul.f32 %v2497_v35, %v2497_v35  ;;  %v797_v29 = vadd.f32 %v796_v43, %v718_v51  ;;  %3291 = vst [vmem:[#allocation74_spill] sm:$0xff] %v2522_v37  ;;  %v769_v48 = vmul.f32 %v2502_v42, %v2502_v42  ;;  %v918_v44 = vadd.f32 %v917_v53, %v761_v1  ;;  %v2537_v35 = vld [vmem:[%s2021_s21 + $0x1d0] sm:$0xff]  ;;  %v2542_v42 = vld [vmem:[%s2021_s21 + $0x2a0] sm:$0xff] }
 0x19b   : > { %v849_v23 = vadd.f32 %v848_v22, %v779_v45  ;;  %3292 = vst [vmem:[#allocation75_spill] sm:$0xff] %v2527_v36  ;;  %v704_v49 = vmul.f32 %v2507_v4, %v2507_v4  ;;  %v865_v45 = vadd.f32 %v864_v52, %v696_v57  ;;  %v2532_v22 = vld [vmem:[%s2021_s21 + $0x3d8] sm:$0xff]  ;;  %v730_v51 = vmul.f32 %v2512_v25, %v2512_v25 }
 0x19c   : > { %3293 = vst [vmem:[#allocation76_spill] sm:$0xff] %v2532_v22  ;;  %v798_v43 = vadd.f32 %v797_v29, %v722_v39  ;;  %3294 = vst [vmem:[#allocation77_spill] sm:$0xff] %v2537_v35  ;;  %v773_v1 = vmul.f32 %v2517_v28, %v2517_v28  ;;  %v919_v53 = vadd.f32 %v918_v44, %v765_v55  ;;  %v2552_v29 = vld [vmem:[%s2021_s21 + $0x1f0] sm:$0xff]  ;;  %v2557_v28 = vld [vmem:[%s2021_s21 + $0x2c0] sm:$0xff] }
 0x19d   : > { %v850_v15 = vrot.slane %v849_v23, 4  ;;  %3295 = vst [vmem:[#allocation78_spill] sm:$0xff] %v2542_v42  ;;  %v708_v57 = vmul.f32 %v2522_v37, %v2522_v37  ;;  %v866_v52 = vadd.f32 %v865_v45, %v700_v31  ;;  %3296 = vst [vmem:[#allocation79_spill] sm:$0xff] %v2547_v63  ;;  %v734_v25 = vmul.f32 %v2527_v36, %v2527_v36  ;;  %v2581_v37 = vld [vmem:[%s2021_s21 + $0x300] sm:$0xff] }
 0x19e   : > { %v799_v39 = vadd.f32 %v798_v43, %v726_v2  ;;  %v777_v55 = vmul.f32 %v2532_v22, %v2532_v22  ;;  %v920_v44 = vadd.f32 %v919_v53, %v769_v48  ;;  %v712_v31 = vmul.f32 %v2537_v35, %v2537_v35  ;;  %v2564_v43 = vld [vmem:[%s2021_s21 + $0x210] sm:$0xff]  ;;  %3300 = vst [vmem:[#allocation83_spill] sm:$0xff] %v2581_v37 }
 0x19f   : > { %v851_v4 = vadd.f32 %v850_v15, %v849_v23  ;;  %v867_v23 = vadd.f32 %v866_v52, %v704_v49  ;;  %v738_v15 = vmul.f32 %v2542_v42, %v2542_v42  ;;  %3297 = vst [vmem:[#allocation80_spill] sm:$0xff] %v2564_v43  ;;  %v781_v22 = vmul.f32 %v2547_v63, %v2547_v63  ;;  %v2571_v49 = vld [vmem:[%s2021_s21 + $0x2e0] sm:$0xff] }
 0x1a0   : > { %v800_v2 = vadd.f32 %v799_v39, %v730_v51  ;;  %v921_v48 = vadd.f32 %v920_v44, %v773_v1  ;;  %v716_v53 = vmul.f32 %v2552_v29, %v2552_v29  ;;  %3298 = vst [vmem:[#allocation81_spill] sm:$0xff] %v2571_v49  ;;  %v742_v52 = vmul.f32 %v2557_v28, %v2557_v28  ;;  %v2576_v51 = vld [vmem:[%s2021_s21 + $0x230] sm:$0xff] }
 0x1a1   : > { %v852_v45 = vrot.slane %v851_v4, 2  ;;  %v868_v36 = vadd.f32 %v867_v23, %v708_v57  ;;  %3299 = vst [vmem:[#allocation82_spill] sm:$0xff] %v2576_v51  ;;  %v720_v1 = vmul.f32 %v2564_v43, %v2564_v43 }
 0x1a2   : > { %v801_v42 = vadd.f32 %v800_v2, %v734_v25  ;;  %v922_v39 = vadd.f32 %v921_v48, %v777_v55  ;;  %v746_v25 = vmul.f32 %v2571_v49, %v2571_v49  ;;  %v724_v55 = vmul.f32 %v2576_v51, %v2576_v51  ;;  %v2626_v51 = vld [vmem:[%s2021_s21 + $0x380] sm:$0xff] }
 0x1a3   : > { %v853_v35 = vadd.f32 %v852_v45, %v851_v4  ;;  %v869_v44 = vadd.f32 %v868_v36, %v712_v31  ;;  %v2584_v4 = vld [vmem:[%s2021_s21 + $0x250] sm:$0xff]  ;;  %v2587_v45 = vld [vmem:[%s2021_s21 + $0x320] sm:$0xff]  ;;  %3308 = vst [vmem:[#allocation91_spill] sm:$0xff] %v2626_v51 }
 0x1a4   : > { %v802_v57 = vadd.f32 %v801_v42, %v738_v15  ;;  %3301 = vst [vmem:[#allocation84_spill] sm:$0xff] %v2584_v4  ;;  %v923_v23 = vadd.f32 %v922_v39, %v781_v22  ;;  %3302 = vst [vmem:[#allocation85_spill] sm:$0xff] %v2587_v45  ;;  %v2596_v31 = vld [vmem:[%s2021_s21 + $0x270] sm:$0xff]  ;;  %v2599_v15 = vld [vmem:[%s2021_s21 + $0x340] sm:$0xff]  ;;  %v750_v22 = vmul.f32 %v2581_v37, %v2581_v37 }
 0x1a5   : > { %v854_v63 = vrot.slane %v853_v35, 1  ;;  %v870_v2 = vadd.f32 %v869_v44, %v716_v53  ;;  %3303 = vst [vmem:[#allocation86_spill] sm:$0xff] %v2596_v31  ;;  %3304 = vst [vmem:[#allocation87_spill] sm:$0xff] %v2599_v15  ;;  %v728_v39 = vmul.f32 %v2584_v4, %v2584_v4  ;;  %v2634_v49 = vld [vmem:[%s2021_s21 + $0x3a0] sm:$0xff] }
 0x1a6   : > { %v803_v36 = vadd.f32 %v802_v57, %v742_v52  ;;  %v924_v42 = vrot.slane %v923_v23, 4  ;;  %v2612_v52 = vld [vmem:[%s2021_s21 + $0x360] sm:$0xff]  ;;  %v732_v57 = vmul.f32 %v2596_v31, %v2596_v31  ;;  %3310 = vst [vmem:[#allocation93_spill] sm:$0xff] %v2634_v49 }
 0x1a7   : > { %v2593_v48 = vadd.f32 %v854_v63, %v853_v35  ;;  %v871_v43 = vadd.f32 %v870_v2, %v720_v1  ;;  %v754_v63 = vmul.f32 %v2587_v45, %v2587_v45  ;;  %v2609_v35 = vld [vmem:[%s2021_s21 + $0x290] sm:$0xff]  ;;  %3306 = vst [vmem:[#allocation89_spill] sm:$0xff] %v2612_v52  ;;  %v758_v1 = vmul.f32 %v2599_v15, %v2599_v15 }
 0x1a8   : > { %3305 = vst [vmem:[#allocation88_spill] sm:$0xff] %v2609_v35  ;;  %v925_v53 = vadd.f32 %v924_v42, %v923_v23  ;;  %v804_v44 = vadd.f32 %v803_v36, %v746_v25  ;;  %v2619_v2 = vld [vmem:[%s2021_s21 + $0x2b0] sm:$0xff]  ;;  %v736_v23 = vmul.f32 %v2609_v35, %v2609_v35  ;;  %v762_v25 = vmul.f32 %v2612_v52, %v2612_v52  ;;  %v2640_v35 = vld [vmem:[%s2021_s21 + $0x3c0] sm:$0xff] }
 0x1a9   : > { %1620 = vrsqrt.f32 %v2593_v48  ;;  %v872_v37 = vadd.f32 %v871_v43, %v724_v55  ;;  %3307 = vst [vmem:[#allocation90_spill] sm:$0xff] %v2619_v2  ;;  %v2629_v55 = vld [vmem:[%s2021_s21 + $0x2d0] sm:$0xff]  ;;  %v740_v15 = vmul.f32 %v2619_v2, %v2619_v2  ;;  %3312 = vst [vmem:[#allocation95_spill] sm:$0xff] %v2640_v35  ;;  %vm939_vm3 = vcmp.eq.f32.partialorder %v2593_v48, inf }
 0x1aa   : > { %v926_v4 = vrot.slane %v925_v53, 2  ;;  %v805_v45 = vadd.f32 %v804_v44, %v750_v22  ;;  %3309 = vst [vmem:[#allocation92_spill] sm:$0xff] %v2629_v55  ;;  %vm941_vm4 = vcmp.eq.f32.partialorder %v2593_v48, 0.0 }
 0x1ab   : > { %v873_v42 = vadd.f32 %v872_v37, %v728_v39  ;;  %v2637_v37 = vld [vmem:[%s2021_s21 + $0x2f0] sm:$0xff] }
 0x1ac   : > { %v927_v36 = vadd.f32 %v926_v4, %v925_v53  ;;  %v806_v43 = vadd.f32 %v805_v45, %v754_v63  ;;  %3311 = vst [vmem:[#allocation94_spill] sm:$0xff] %v2637_v37  ;;  %v766_v4 = vmul.f32 %v2626_v51, %v2626_v51  ;;  %v744_v45 = vmul.f32 %v2629_v55, %v2629_v55  ;;  %v2646_v63 = vld [vmem:[#allocation2] sm:$0xff]  ;;  %v2656_v51 = vld [vmem:[%s2021_s21 + $0x3e0] sm:$0xff] }
 0x1ad   : > { %v874_v31 = vadd.f32 %v873_v42, %v732_v57  ;;  %3313 = vst [vmem:[#allocation96_spill] sm:$0xff] %v2646_v63  ;;  %v770_v57 = vmul.f32 %v2634_v49, %v2634_v49  ;;  %3315 = vst [vmem:[#allocation98_spill] sm:$0xff] %v2656_v51  ;;  %v748_v55 = vmul.f32 %v2637_v37, %v2637_v37  ;;  %v2687_v37 = vld [vmem:[%s2021_s21 + $0x370] sm:$0xff] }
 0x1ae   : > { %v928_v22 = vrot.slane %v927_v36, 1  ;;  %v807_v44 = vadd.f32 %v806_v43, %v758_v1  ;;  %v2651_v1 = vld [vmem:[%s2021_s21 + $0x310] sm:$0xff]  ;;  %3318 = vst [vmem:[#allocation101_spill] sm:$0xff] %v2687_v37 }
 0x1af   : > { %v875_v39 = vadd.f32 %v874_v31, %v736_v23  ;;  %3314 = vst [vmem:[#allocation97_spill] sm:$0xff] %v2651_v1  ;;  %v942_v23 = vand.u32 2147483648, %v2593_v48 }
 0x1b0   : > { %v929_v53 = vadd.f32 %v928_v22, %v927_v36  ;;  %v808_v42 = vadd.f32 %v807_v44, %v762_v25  ;;  %v1496_v36 = vcombine.high %v2646_v63, %v2646_v63  ;;  %v2667_v25 = vld [vmem:[%s2021_s21 + $0x330] sm:$0xff] }
 0x1b1   : > { %v876_v43 = vadd.f32 %v875_v39, %v740_v15  ;;  %v774_v15 = vmul.f32 %v2640_v35, %v2640_v35  ;;  %3316 = vst [vmem:[#allocation99_spill] sm:$0xff] %v2667_v25  ;;  %v752_v39 = vmul.f32 %v2651_v1, %v2651_v1  ;;  %v778_v35 = vmul.f32 %v2656_v51, %v2656_v51 }
 0x1b2   : > { %1622 = vrsqrt.f32 %v929_v53  ;;  %v809_v44 = vadd.f32 %v808_v42, %v766_v4  ;;  %1198 = vmatprep.mubr.bf16.mxu0 %v1496_v36  ;;  %1239 = vmatprep.mubr.bf16.mxu1 %v1496_v36  ;;  %v2680_v4 = vld [vmem:[%s2021_s21 + $0x350] sm:$0xff]  ;;  %v1825_v42 = vmov 0   ;;  %v756_v36 = vmul.f32 %v2667_v25, %v2667_v25 }
 0x1b3   : > { %v1621_v31 = vpop.eup %1620  ;;  %v877_v49 = vadd.f32 %v876_v43, %v744_v45  ;;  %3317 = vst [vmem:[#allocation100_spill] sm:$0xff] %v2680_v4  ;;  %1616 = vset.pattern.permute.xlu0 %v1825_v42  ;;  %1617 = vset.pattern.permute.xlu1 %v1825_v42  ;;  %v760_v2 = vmul.f32 %v2680_v4, %v2680_v4  ;;  %v2692_v42 = vld [vmem:[%s2021_s21 + $0x390] sm:$0xff]  ;;  %vm953_vm5 = vcmp.eq.f32.partialorder %v929_v53, inf  ;;  %vm955_vm6 = vcmp.eq.f32.partialorder %v929_v53, 0.0 }
 0x1b4   : > { %v938_v22 = vmul.f32 %v1621_v31, %v2593_v48  ;;  %v1256_v31 = vld [vmem:[%s3121_s2] sm:$0xff]  ;;  %v810_v43 = vadd.f32 %v809_v44, %v770_v57  ;;  %3319 = vst [vmem:[#allocation102_spill] sm:$0xff] %v2692_v42  ;;  %v764_v57 = vmul.f32 %v2687_v37, %v2687_v37 }
 0x1b5   : > { %v878_v1 = vadd.f32 %v877_v49, %v748_v55  ;;  %1269 = vperm.xlu0 %1616, %v1256_v31  }
 0x1b6   : > { %v940_v63 = vsel %vm939_vm3, %v2593_v48, %v938_v22  ;;  %v811_v51 = vadd.f32 %v810_v43, %v774_v15 }
 0x1b7   : > { %v943_v45 = vsel %vm941_vm4, %v942_v23, %v940_v63  ;;  %v879_v52 = vadd.f32 %v878_v1, %v752_v39  ;;  %v2695_v63 = vld [vmem:[%s2021_s21 + $0x3b0] sm:$0xff]  ;;  %v768_v23 = vmul.f32 %v2692_v42, %v2692_v42  ;;  %v956_v1 = vand.u32 2147483648, %v929_v53 }
 0x1b8   : > { %v959_v22 = vmax.f32 %v943_v45, 1e-12  ;;  %v812_v48 = vadd.f32 %v811_v51, %v778_v35  ;;  %v772_v39 = vmul.f32 %v2695_v63, %v2695_v63  ;;  %v2704_v35 = vld [vmem:[%s2021_s21 + $0x3d0] sm:$0xff] }
 0x1b9   : > { %v880_v49 = vadd.f32 %v879_v52, %v756_v36  ;;  %v2707_v52 = vld [vmem:[%s2021_s21 + $0x3f0] sm:$0xff] }
 0x1ba   : > { %1624 = vrcp.f32 %v959_v22  ;;  %v813_v55 = vrot.slane %v812_v48, 4 }
 0x1bb   : > { %v881_v15 = vadd.f32 %v880_v49, %v760_v2  ;;  %v776_v2 = vmul.f32 %v2704_v35, %v2704_v35 }
 0x1bc   : > { %v1623_v44 = vpop.eup %1622  ;;  %v814_v51 = vadd.f32 %v813_v55, %v812_v48  ;;  %v780_v48 = vmul.f32 %v2707_v52, %v2707_v52 }
 0x1bd   : > { %v952_v31 = vmul.f32 %v1623_v44, %v929_v53  ;;  %v882_v45 = vadd.f32 %v881_v15, %v764_v57 }
 0x1be   : > { %v815_v22 = vrot.slane %v814_v51, 2 }
 0x1bf   : > { %v954_v43 = vsel %vm953_vm5, %v929_v53, %v952_v31  ;;  %v883_v36 = vadd.f32 %v882_v45, %v768_v23 }
 0x1c0   : > { %v957_v37 = vsel %vm955_vm6, %v956_v1, %v954_v43  ;;  %v816_v42 = vadd.f32 %v815_v22, %v814_v51 }
 0x1c1   : > { %v961_v49 = vmax.f32 %v957_v37, 1e-12  ;;  %v884_v4 = vadd.f32 %v883_v36, %v772_v39 }
 0x1c2   : > { %v817_v55 = vrot.slane %v816_v42, 1 }
 0x1c3   : > { %1626 = vrcp.f32 %v961_v49  ;;  %v885_v23 = vadd.f32 %v884_v4, %v776_v2 }
 0x1c4   : > { %v2711_v25 = vpop.eup %1624  ;;  %v818_v44 = vadd.f32 %v817_v55, %v816_v42 }
 0x1c5   : > { %v965_v57 = vmul.f32 %v2711_v25, %v2055_v58  ;;  %v971_v53 = vmul.f32 %v2711_v25, %v2058_v16  ;;  %v886_v1 = vadd.f32 %v885_v23, %v780_v48  ;;  %v979_v23 = vmul.f32 %v2711_v25, %v2064_v60 }
 0x1c6   : > { %1628 = vrsqrt.f32 %v818_v44  ;;  %vm932_vm7 = vcmp.eq.f32.partialorder %v818_v44, inf  ;;  %v935_v42 = vand.u32 2147483648, %v818_v44  ;;  %vm934_vm8 = vcmp.eq.f32.partialorder %v818_v44, 0.0 }
 0x1c7   : > { %v1095_v15 = vpack.c.bf16 %v971_v53, %v965_v57  ;;  %v887_v37 = vrot.slane %v886_v1, 4  ;;  %v983_v60 = vmul.f32 %v2711_v25, %v2073_v0  ;;  %v995_v0 = vmul.f32 %v2711_v25, %v2088_v9 }
 0x1c9   : > { %1166 = vmatprep.subr.bf16.mxu0 %v1095_v15  ;;  %v888_v39 = vadd.f32 %v887_v37, %v886_v1 }
 0x1cb   : > { %v889_v31 = vrot.slane %v888_v39, 2 }
 0x1cd   : > { %v2719_v51 = vpop.eup %1626  ;;  %v890_v16 = vadd.f32 %v889_v31, %v888_v39 }
 0x1ce   : > { %v969_v45 = vmul.f32 %v2719_v51, %v2096_v13  ;;  %v973_v58 = vmul.f32 %v2719_v51, %v2101_v17  ;;  %v975_v17 = vmul.f32 %v2711_v25, %v2061_v59  ;;  %v981_v9 = vmul.f32 %v2719_v51, %v2107_v19 }
 0x1cf   : > { %v891_v22 = vrot.slane %v890_v16, 1 }
 0x1d0   : > { %v1097_v43 = vpack.c.bf16 %v973_v58, %v969_v45  ;;  %v1629_v4 = vpop.eup %1628  ;;  %v1099_v58 = vpack.c.bf16 %v979_v23, %v975_v17  ;;  %v3321_v23 = vld [vmem:[#allocation44_spill] sm:$0xff] }
 0x1d1   : > { %v931_v36 = vmul.f32 %v1629_v4, %v818_v44  ;;  %v892_v2 = vadd.f32 %v891_v22, %v890_v16  ;;  %v987_v16 = vmul.f32 %v2711_v25, %v2078_v3  ;;  %v999_v3 = vmul.f32 %v2711_v25, %v2093_v12 }
 0x1d2   : > { %1207 = vmatprep.subr.bf16.mxu1 %v1097_v43  ;;  %v1007_v12 = vmul.f32 %v2711_v25, %v2124_v27 }
 0x1d3   : > { %v933_v49 = vsel %vm932_vm7, %v818_v44, %v931_v36  ;;  %1630 = vrsqrt.f32 %v892_v2  ;;  %vm946_vm9 = vcmp.eq.f32.partialorder %v892_v2, inf  ;;  %v949_v13 = vand.u32 2147483648, %v892_v2 }
 0x1d4   : > { %v936_v48 = vsel %vm934_vm8, %v935_v42, %v933_v49  ;;  %vm948_vm10 = vcmp.eq.f32.partialorder %v892_v2, 0.0  ;;  %v1103_v22 = vpack.c.bf16 %v987_v16, %v983_v60 }
 0x1d5   : > { %v958_v57 = vmax.f32 %v936_v48, 1e-12 }
 0x1d7   : > { %1632 = vrcp.f32 %v958_v57 }
 0x1dd   : > { %v1631_v53 = vpop.eup %1630 }
 0x1de   : > { %v945_v55 = vmul.f32 %v1631_v53, %v892_v2 }
 0x1e0   : > { %v947_v15 = vsel %vm946_vm9, %v892_v2, %v945_v55  ;;  %v3320_v55 = vld [vmem:[#allocation46_spill] sm:$0xff] }
 0x1e1   : > { %v2729_v1 = vpop.eup %1632  ;;  %v950_v37 = vsel %vm948_vm10, %v949_v13, %v947_v15  ;;  %v3322_v15 = vld [vmem:[#allocation48_spill] sm:$0xff] }
 0x1e2   : > { %v963_v44 = vmul.f32 %v2729_v1, %v2189_v8  ;;  %v970_v39 = vmul.f32 %v2729_v1, %v2192_v10  ;;  %v960_v31 = vmax.f32 %v950_v37, 1e-12  ;;  %v974_v45 = vmul.f32 %v2729_v1, %v2205_v24  ;;  %v3323_v37 = vld [vmem:[#allocation17_spill] sm:$0xff] }
 0x1e3   : > { %v978_v59 = vmul.f32 %v2729_v1, %v2222_v38  ;;  %v982_v10 = vmul.f32 %v2729_v1, %v2237_v50  ;;  %v986_v24 = vmul.f32 %v2729_v1, %v2252_v5  ;;  %v991_v38 = vmul.f32 %v2711_v25, %v2083_v6 }
 0x1e4   : > { %v1094_v43 = vpack.c.bf16 %v970_v39, %v963_v44  ;;  %1634 = vrcp.f32 %v960_v31  ;;  %v990_v42 = vmul.f32 %v2729_v1, %v2267_v32  ;;  %v994_v50 = vmul.f32 %v2729_v1, %v2282_v61  ;;  %v3324_v39 = vld [vmem:[#allocation18_spill] sm:$0xff]  ;;  %v3325_v31 = vld [vmem:[#allocation20_spill] sm:$0xff] }
 0x1e5   : > { %v1098_v8 = vpack.c.bf16 %v978_v59, %v974_v45  ;;  %v1102_v4 = vpack.c.bf16 %v986_v24, %v982_v10  ;;  %v1003_v5 = vmul.f32 %v2711_v25, %v2112_v21  ;;  %v1107_v36 = vpack.c.bf16 %v995_v0, %v991_v38  ;;  %v3328_v10 = vld [vmem:[#allocation54_spill] sm:$0xff]  ;;  %v3329_v38 = vld [vmem:[#allocation52_spill] sm:$0xff] }
 0x1e6   : > { %1167 = vmatpush1.bf16.msra.mxu0 %v1094_v43  ;;  %v977_v6 = vmul.f32 %v2719_v51, %v2104_v18  ;;  %v1011_v32 = vmul.f32 %v2711_v25, %v2134_v34  ;;  %v1106_v61 = vpack.c.bf16 %v994_v50, %v990_v42  ;;  %v998_v21 = vmul.f32 %v2729_v1, %v2303_v7  ;;  %v3327_v43 = vld [vmem:[#allocation50_spill] sm:$0xff]  ;;  %v3331_v50 = vld [vmem:[#allocation19_spill] sm:$0xff] }
 0x1e7   : > { %1168 = vmatprep.subr.bf16.mxu0 %v1099_v58  ;;  %v1111_v49 = vpack.c.bf16 %v1003_v5, %v999_v3  ;;  %v1002_v18 = vmul.f32 %v2729_v1, %v2321_v47  ;;  %v985_v7 = vmul.f32 %v2719_v51, %v2121_v26  ;;  %v989_v47 = vmul.f32 %v2719_v51, %v2131_v33  ;;  %v3326_v58 = vld [vmem:[#allocation22_spill] sm:$0xff]  ;;  %v3330_v3 = vld [vmem:[#allocation56_spill] sm:$0xff] }
 0x1e8   : > { %v1101_v57 = vpack.c.bf16 %v981_v9, %v977_v6  ;;  %v1115_v13 = vpack.c.bf16 %v1011_v32, %v1007_v12  ;;  %v1010_v17 = vmul.f32 %v2729_v1, %v3320_v55  ;;  %v993_v44 = vmul.f32 %v2719_v51, %v3323_v37  ;;  %v3333_v9 = vld [vmem:[#allocation24_spill] sm:$0xff]  ;;  %v3334_v32 = vld [vmem:[#allocation26_spill] sm:$0xff] }
 0x1e9   : > { %v1023_v45 = vmul.f32 %v2711_v25, %v3325_v31  ;;  %v1027_v59 = vmul.f32 %v2711_v25, %v3326_v58  ;;  %v1018_v24 = vmul.f32 %v2729_v1, %v3328_v10  ;;  %v1001_v5 = vmul.f32 %v2719_v51, %v3331_v50  ;;  %v3343_v37 = vld [vmem:[#allocation68_spill] sm:$0xff]  ;;  %v3348_v10 = vld [vmem:[#allocation69_spill] sm:$0xff] }
 0x1ea   : > { %1169 = vmatpush1.bf16.msra.mxu0 %v1098_v8  ;;  %v1014_v8 = vmul.f32 %v2729_v1, %v3327_v43  ;;  %v1031_v12 = vmul.f32 %v2711_v25, %v3333_v9  ;;  %v3353_v9 = vld [vmem:[#allocation33_spill] sm:$0xff] }
 0x1eb   : > { %1170 = vmatprep.subr.bf16.mxu0 %v1103_v22 }
 0x1ee   : > { %v2767_v2 = vpop.eup %1634  ;;  %1171 = vmatpush1.bf16.msra.mxu0 %v1102_v4 }
 0x1ef   : > { %v967_v19 = vmul.f32 %v2767_v2, %v2292_v54  ;;  %v972_v27 = vmul.f32 %v2767_v2, %v2295_v14  ;;  %v976_v34 = vmul.f32 %v2767_v2, %v2313_v30  ;;  %v980_v48 = vmul.f32 %v2767_v2, %v2335_v11  ;;  %1172 = vmatprep.subr.bf16.mxu0 %v1107_v36  ;;  %v3332_v36 = vld [vmem:[#allocation21_spill] sm:$0xff] }
 0x1f0   : > { %v1015_v54 = vmul.f32 %v2711_v25, %v2144_v40  ;;  %v1019_v14 = vmul.f32 %v2711_v25, %v2154_v46  ;;  %v1110_v30 = vpack.c.bf16 %v1002_v18, %v998_v21  ;;  %v1006_v11 = vmul.f32 %v2729_v1, %v2343_v20  ;;  %v3335_v18 = vld [vmem:[#allocation58_spill] sm:$0xff] }
 0x1f1   : > { %v1096_v53 = vpack.c.bf16 %v972_v27, %v967_v19  ;;  %v1100_v26 = vpack.c.bf16 %v980_v48, %v976_v34  ;;  %v984_v33 = vmul.f32 %v2767_v2, %v3321_v23  ;;  %v988_v40 = vmul.f32 %v2767_v2, %v3322_v15  ;;  %v3336_v48 = vld [vmem:[#allocation60_spill] sm:$0xff] }
 0x1f2   : > { %1173 = vmatpush1.bf16.msra.mxu0 %v1106_v61  ;;  %v1105_v46 = vpack.c.bf16 %v989_v47, %v985_v7  ;;  %v997_v20 = vmul.f32 %v2719_v51, %v3324_v39  ;;  %v1114_v60 = vpack.c.bf16 %v1010_v17, %v1006_v11  ;;  %v1119_v16 = vpack.c.bf16 %v1019_v14, %v1015_v54  ;;  %v3338_v14 = vld [vmem:[#allocation25_spill] sm:$0xff]  ;;  %v3340_v11 = vld [vmem:[#allocation30_spill] sm:$0xff]  ;;  %v3341_v23 = vld [vmem:[#allocation64_spill] sm:$0xff] }
 0x1f3   : > { %1208 = vmatpush1.bf16.msra.mxu1 %v1096_v53  ;;  %1174 = vmatprep.subr.bf16.mxu0 %v1111_v49  ;;  %v1104_v22 = vpack.c.bf16 %v988_v40, %v984_v33  ;;  %v992_v0 = vmul.f32 %v2767_v2, %v3329_v38  ;;  %v996_v4 = vmul.f32 %v2767_v2, %v3330_v3  ;;  %v3337_v53 = vld [vmem:[#allocation23_spill] sm:$0xff]  ;;  %v3342_v40 = vld [vmem:[#allocation66_spill] sm:$0xff] }
 0x1f4   : > { %1209 = vmatprep.subr.bf16.mxu1 %v1101_v57  ;;  %v1109_v42 = vpack.c.bf16 %v997_v20, %v993_v44  ;;  %v1005_v6 = vmul.f32 %v2719_v51, %v3332_v36  ;;  %v1035_v61 = vmul.f32 %v2711_v25, %v3334_v32  ;;  %v1118_v49 = vpack.c.bf16 %v1018_v24, %v1014_v8  ;;  %v3344_v20 = vld [vmem:[#allocation27_spill] sm:$0xff] }
 0x1f5   : > { %v1123_v21 = vpack.c.bf16 %v1027_v59, %v1023_v45  ;;  %v1022_v19 = vmul.f32 %v2729_v1, %v3335_v18  ;;  %v1026_v27 = vmul.f32 %v2729_v1, %v2443_v56  ;;  %v1108_v34 = vpack.c.bf16 %v996_v4, %v992_v0  ;;  %v3345_v45 = vld [vmem:[#allocation29_spill] sm:$0xff]  ;;  %v3346_v59 = vld [vmem:[#allocation32_spill] sm:$0xff]  ;;  %v3350_v3 = vld [vmem:[#allocation71_spill] sm:$0xff] }
 0x1f6   : > { %1175 = vmatpush1.bf16.msra.mxu0 %v1110_v30  ;;  %v1000_v57 = vmul.f32 %v2767_v2, %v3336_v48  ;;  %v1004_v7 = vmul.f32 %v2767_v2, %v2455_v62  ;;  %v1113_v47 = vpack.c.bf16 %v1005_v6, %v1001_v5  ;;  %v1009_v54 = vmul.f32 %v2719_v51, %v3337_v53  ;;  %v3352_v36 = vld [vmem:[#allocation31_spill] sm:$0xff]  ;;  %v3357_v48 = vld [vmem:[#allocation38_spill] sm:$0xff] }
 0x1f7   : > { %1210 = vmatpush1.bf16.msra.mxu1 %v1100_v26  ;;  %1176 = vmatprep.subr.bf16.mxu0 %v1115_v13  ;;  %v1013_v30 = vmul.f32 %v2719_v51, %v3338_v14  ;;  %v3339_v13 = vld [vmem:[#allocation28_spill] sm:$0xff]  ;;  %v1043_v55 = vmul.f32 %v2711_v25, %v3340_v11  ;;  %v1122_v17 = vpack.c.bf16 %v1026_v27, %v1022_v19  ;;  %v3355_v18 = vld [vmem:[#allocation75_spill] sm:$0xff]  ;;  %v3356_v27 = vld [vmem:[#allocation78_spill] sm:$0xff] }
 0x1f8   : > { %1211 = vmatprep.subr.bf16.mxu1 %v1105_v46  ;;  %v1039_v56 = vmul.f32 %v2711_v25, %v3339_v13  ;;  %v1127_v26 = vpack.c.bf16 %v1035_v61, %v1031_v12  ;;  %v1030_v62 = vmul.f32 %v2729_v1, %v3341_v23  ;;  %v1034_v33 = vmul.f32 %v2729_v1, %v2480_v41  ;;  %v3354_v61 = vld [vmem:[#allocation36_spill] sm:$0xff] }
 0x1f9   : > { %v1112_v15 = vpack.c.bf16 %v1004_v7, %v1000_v57  ;;  %v1008_v46 = vmul.f32 %v2767_v2, %v3342_v40  ;;  %v1012_v44 = vmul.f32 %v2767_v2, %v3343_v37  ;;  %v1117_v39 = vpack.c.bf16 %v1013_v30, %v1009_v54  ;;  %v3359_v30 = vld [vmem:[#allocation35_spill] sm:$0xff]  ;;  %v3364_v37 = vld [vmem:[#allocation80_spill] sm:$0xff] }
 0x1fa   : > { %1177 = vmatpush1.bf16.msra.mxu0 %v1114_v60  ;;  %v1017_v31 = vmul.f32 %v2719_v51, %v3344_v20  ;;  %v1021_v58 = vmul.f32 %v2719_v51, %v3345_v45  ;;  %v1047_v41 = vmul.f32 %v2711_v25, %v3346_v59  ;;  %v3347_v60 = vld [vmem:[#allocation34_spill] sm:$0xff]  ;;  %v1126_v43 = vpack.c.bf16 %v1034_v33, %v1030_v62  ;;  %v3366_v45 = vld [vmem:[#allocation39_spill] sm:$0xff]  ;;  %v3367_v59 = vld [vmem:[#allocation41_spill] sm:$0xff] }
 0x1fb   : > { %1212 = vmatpush1.bf16.msra.mxu1 %v1104_v22  ;;  %1178 = vmatprep.subr.bf16.mxu0 %v1119_v16  ;;  %v1051_v16 = vmul.f32 %v2711_v25, %v3347_v60  ;;  %v1131_v8 = vpack.c.bf16 %v1043_v55, %v1039_v56  ;;  %v1038_v24 = vmul.f32 %v2729_v1, %v3348_v10  ;;  %v3349_v22 = vld [vmem:[#allocation72_spill] sm:$0xff]  ;;  %v3360_v56 = vld [vmem:[#allocation37_spill] sm:$0xff] }
 0x1fc   : > { %1213 = vmatprep.subr.bf16.mxu1 %v1109_v42  ;;  %v1042_v38 = vmul.f32 %v2729_v1, %v3349_v22  ;;  %v1116_v0 = vpack.c.bf16 %v1012_v44, %v1008_v46  ;;  %v1016_v4 = vmul.f32 %v2767_v2, %v3350_v3  ;;  %v3351_v42 = vld [vmem:[#allocation74_spill] sm:$0xff]  ;;  %v1121_v5 = vpack.c.bf16 %v1021_v58, %v1017_v31  ;;  %v3361_v55 = vld [vmem:[#allocation40_spill] sm:$0xff]  ;;  %v3368_v60 = vld [vmem:[#allocation45_spill] sm:$0xff] }
 0x1fd   : > { %v1020_v50 = vmul.f32 %v2767_v2, %v3351_v42  ;;  %v1025_v6 = vmul.f32 %v2719_v51, %v3352_v36  ;;  %v1029_v12 = vmul.f32 %v2719_v51, %v3353_v9  ;;  %v1135_v32 = vpack.c.bf16 %v1051_v16, %v1047_v41 }
 0x1fe   : > { %1179 = vmatpush1.bf16.msra.mxu0 %v1118_v49  ;;  %v1055_v49 = vmul.f32 %v2711_v25, %v3354_v61  ;;  %v1046_v19 = vmul.f32 %v2729_v1, %v3355_v18  ;;  %v1059_v57 = vmul.f32 %v2711_v25, %v3357_v48  ;;  %v1028_v54 = vmul.f32 %v2767_v2, %v2552_v29  ;;  %v3376_v61 = vld [vmem:[#allocation53_spill] sm:$0xff] }
 0x1ff   : > { %1214 = vmatpush1.bf16.msra.mxu1 %v1108_v34  ;;  %1180 = vmatprep.subr.bf16.mxu0 %v1123_v21  ;;  %v1130_v21 = vpack.c.bf16 %v1042_v38, %v1038_v24  ;;  %v1050_v34 = vmul.f32 %v2729_v1, %v3356_v27  ;;  %v1120_v7 = vpack.c.bf16 %v1020_v50, %v1016_v4  ;;  %v3370_v24 = vld [vmem:[#allocation85_spill] sm:$0xff]  ;;  %v3372_v4 = vld [vmem:[#allocation84_spill] sm:$0xff]  ;;  %v3373_v50 = vld [vmem:[#allocation86_spill] sm:$0xff] }
 0x200   : > { %1215 = vmatprep.subr.bf16.mxu1 %v1113_v47  ;;  %v3358_v47 = vld [vmem:[#allocation77_spill] sm:$0xff]  ;;  %v1125_v14 = vpack.c.bf16 %v1029_v12, %v1025_v6  ;;  %v1033_v13 = vmul.f32 %v2719_v51, %v3359_v30  ;;  %v1037_v11 = vmul.f32 %v2719_v51, %v3360_v56  ;;  %v1139_v33 = vpack.c.bf16 %v1059_v57, %v1055_v49  ;;  %v3374_v6 = vld [vmem:[#allocation43_spill] sm:$0xff] }
 0x201   : > { %v1024_v53 = vmul.f32 %v2767_v2, %v3358_v47  ;;  %v1134_v62 = vpack.c.bf16 %v1050_v34, %v1046_v19  ;;  %v1054_v29 = vmul.f32 %v2729_v1, %v2557_v28  ;;  %v1032_v44 = vmul.f32 %v2767_v2, %v3364_v37  ;;  %v3371_v38 = vld [vmem:[#allocation49_spill] sm:$0xff]  ;;  %v3375_v12 = vld [vmem:[#allocation47_spill] sm:$0xff] }
 0x202   : > { %1181 = vmatpush1.bf16.msra.mxu0 %v1122_v17  ;;  %v1063_v17 = vmul.f32 %v2711_v25, %v3361_v55  ;;  %v1129_v31 = vpack.c.bf16 %v1037_v11, %v1033_v13  ;;  %v1041_v58 = vmul.f32 %v2719_v51, %v3366_v45  ;;  %v1045_v28 = vmul.f32 %v2719_v51, %v3367_v59  ;;  %v3378_v34 = vld [vmem:[#allocation87_spill] sm:$0xff]  ;;  %v3379_v57 = vld [vmem:[#allocation89_spill] sm:$0xff]  ;;  %v3389_v45 = vld [vmem:[#allocation94_spill] sm:$0xff] }
 0x203   : > { %1216 = vmatpush1.bf16.msra.mxu1 %v1112_v15  ;;  %1182 = vmatprep.subr.bf16.mxu0 %v1127_v26  ;;  %v3362_v26 = vld [vmem:[#allocation42_spill] sm:$0xff]  ;;  %v3363_v15 = vld [vmem:[#allocation81_spill] sm:$0xff]  ;;  %v1124_v46 = vpack.c.bf16 %v1028_v54, %v1024_v53  ;;  %v1071_v16 = vmul.f32 %v2711_v25, %v3368_v60  ;;  %v1066_v22 = vmul.f32 %v2729_v1, %v3370_v24  ;;  %v3380_v53 = vld [vmem:[#allocation88_spill] sm:$0xff] }
 0x204   : > { %1217 = vmatprep.subr.bf16.mxu1 %v1117_v39  ;;  %v1067_v23 = vmul.f32 %v2711_v25, %v3362_v26  ;;  %v1058_v40 = vmul.f32 %v2729_v1, %v3363_v15  ;;  %v3365_v39 = vld [vmem:[#allocation82_spill] sm:$0xff]  ;;  %v1040_v42 = vmul.f32 %v2767_v2, %v3372_v4  ;;  %v1133_v36 = vpack.c.bf16 %v1045_v28, %v1041_v58  ;;  %v3382_v56 = vld [vmem:[#allocation51_spill] sm:$0xff] }
 0x205   : > { %v1036_v20 = vmul.f32 %v2767_v2, %v3365_v39  ;;  %v1049_v9 = vmul.f32 %v2719_v51, %v3374_v6  ;;  %v1079_v49 = vmul.f32 %v2711_v25, %v3376_v61  ;;  %v1070_v48 = vmul.f32 %v2729_v1, %v3378_v34  ;;  %v3383_v55 = vld [vmem:[#allocation55_spill] sm:$0xff]  ;;  %v3391_v60 = vld [vmem:[#allocation62_spill] sm:$0xff]  ;;  %v3401_v34 = vld [vmem:[#allocation73_spill] sm:$0xff] }
 0x206   : > { %1183 = vmatpush1.bf16.msra.mxu0 %v1126_v43  ;;  %v1143_v41 = vpack.c.bf16 %v1067_v23, %v1063_v17  ;;  %v1138_v43 = vpack.c.bf16 %v1058_v40, %v1054_v29  ;;  %v1048_v54 = vmul.f32 %v2767_v2, %v3380_v53  ;;  %v1057_v11 = vmul.f32 %v2719_v51, %v3382_v56  ;;  %v3384_v23 = vld [vmem:[#allocation61_spill] sm:$0xff]  ;;  %v3385_v29 = vld [vmem:[#allocation91_spill] sm:$0xff]  ;;  %v3393_v24 = vld [vmem:[#allocation98_spill] sm:$0xff] }
 0x207   : > { %1218 = vmatpush1.bf16.msra.mxu1 %v1116_v0  ;;  %1184 = vmatprep.subr.bf16.mxu0 %v1131_v8  ;;  %v3369_v8 = vld [vmem:[#allocation83_spill] sm:$0xff]  ;;  %v1075_v0 = vmul.f32 %v2711_v25, %v3371_v38  ;;  %v1128_v3 = vpack.c.bf16 %v1036_v20, %v1032_v44  ;;  %v1061_v17 = vmul.f32 %v2719_v51, %v3383_v55  ;;  %v3386_v40 = vld [vmem:[#allocation93_spill] sm:$0xff]  ;;  %v3388_v20 = vld [vmem:[#allocation92_spill] sm:$0xff] }
 0x208   : > { %1219 = vmatprep.subr.bf16.mxu1 %v1121_v5  ;;  %v1062_v10 = vmul.f32 %v2729_v1, %v3369_v8  ;;  %v1044_v5 = vmul.f32 %v2767_v2, %v3373_v50  ;;  %v1078_v15 = vmul.f32 %v2729_v1, %v3385_v29  ;;  %v3387_v37 = vld [vmem:[#allocation63_spill] sm:$0xff]  ;;  %v1060_v58 = vmul.f32 %v2767_v2, %v3389_v45  ;;  %v3403_v53 = vld [vmem:[#allocation102_spill] sm:$0xff] }
 0x209   : > { %v1147_v27 = vpack.c.bf16 %v1075_v0, %v1071_v16  ;;  %v1091_v44 = vmul.f32 %v2711_v25, %v3387_v37  ;;  %v1141_v59 = vpack.c.bf16 %v1061_v17, %v1057_v11  ;;  %v3390_v28 = vld [vmem:[#allocation59_spill] sm:$0xff]  ;;  %v1069_v16 = vmul.f32 %v2719_v51, %v3391_v60  ;;  %v3394_v0 = vld [vmem:[#allocation97_spill] sm:$0xff] }
 0x20a   : > { %1185 = vmatpush1.bf16.msra.mxu0 %v1130_v21  ;;  %v3377_v21 = vld [vmem:[#allocation57_spill] sm:$0xff]  ;;  %v1142_v19 = vpack.c.bf16 %v1066_v22, %v1062_v10  ;;  %v1132_v47 = vpack.c.bf16 %v1044_v5, %v1040_v42  ;;  %v3392_v8 = vld [vmem:[#allocation95_spill] sm:$0xff]  ;;  %v1090_v22 = vmul.f32 %v2729_v1, %v3393_v24 }
 0x20b   : > { %1220 = vmatpush1.bf16.msra.mxu1 %v1120_v7  ;;  %1186 = vmatprep.subr.bf16.mxu0 %v1135_v32  ;;  %v1053_v32 = vmul.f32 %v2719_v51, %v3375_v12  ;;  %v1083_v18 = vmul.f32 %v2711_v25, %v3377_v21  ;;  %v1074_v7 = vmul.f32 %v2729_v1, %v3379_v57  ;;  %v3395_v4 = vld [vmem:[#allocation99_spill] sm:$0xff]  ;;  %v3396_v5 = vld [vmem:[#allocation65_spill] sm:$0xff]  ;;  %v3402_v57 = vld [vmem:[#allocation96_spill] sm:$0xff] }
 0x20c   : > { %1221 = vmatprep.subr.bf16.mxu1 %v1125_v14  ;;  %v3381_v14 = vld [vmem:[#allocation90_spill] sm:$0xff]  ;;  %v1086_v10 = vmul.f32 %v2729_v1, %v3392_v8  ;;  %v1068_v42 = vmul.f32 %v2767_v2, %v3395_v4  ;;  %v3397_v6 = vld [vmem:[#allocation67_spill] sm:$0xff] }
 0x20d   : > { %v1052_v30 = vmul.f32 %v2767_v2, %v3381_v14  ;;  %v1137_v13 = vpack.c.bf16 %v1053_v32, %v1049_v9  ;;  %v1151_v26 = vpack.c.bf16 %v1083_v18, %v1079_v49  ;;  %v1077_v9 = vmul.f32 %v2719_v51, %v3397_v6  ;;  %v3398_v32 = vld [vmem:[#allocation100_spill] sm:$0xff]  ;;  %v3399_v49 = vld [vmem:[#allocation101_spill] sm:$0xff]  ;;  %v3405_v11 = vld [vmem:[#allocation79_spill] sm:$0xff] }
 0x20e   : > { %1187 = vmatpush1.bf16.msra.mxu0 %v1134_v62  ;;  %v1087_v62 = vmul.f32 %v2711_v25, %v3384_v23  ;;  %v1154_v12 = vpack.c.bf16 %v1090_v22, %v1086_v10  ;;  %v1072_v61 = vmul.f32 %v2767_v2, %v3398_v32  ;;  %v1076_v21 = vmul.f32 %v2767_v2, %v3399_v49 }
 0x20f   : > { %1222 = vmatpush1.bf16.msra.mxu1 %v1124_v46  ;;  %1188 = vmatprep.subr.bf16.mxu0 %v1139_v33  ;;  %v1146_v33 = vpack.c.bf16 %v1074_v7, %v1070_v48  ;;  %v1082_v46 = vmul.f32 %v2729_v1, %v3386_v40  ;;  %v1136_v39 = vpack.c.bf16 %v1052_v30, %v1048_v54  ;;  %v1263_v40 = vstv %s1501_s26 }
 0x210   : > { %1223 = vmatprep.subr.bf16.mxu1 %v1129_v31  ;;  %v1056_v31 = vmul.f32 %v2767_v2, %v3388_v20  ;;  %v1155_v25 = vpack.c.bf16 %v1091_v44, %v1087_v62  ;;  %v1085_v48 = vmul.f32 %v2719_v51, %v3401_v34  ;;  %v1495_v7 = vcombine.low %v3402_v57, %v3402_v57 }
 0x211   : > { %v1080_v54 = vmul.f32 %v2767_v2, %v3403_v53  ;;  %v1084_v14 = vmul.f32 %v2767_v2, %v2695_v63  ;;  %v1093_v55 = vmul.f32 %v2719_v51, %v3405_v11  ;;  %v1092_v23 = vmul.f32 %v2767_v2, %v2707_v52 }
 0x212   : > { %1189 = vmatpush1.bf16.msra.mxu0 %v1138_v43  ;;  %v1150_v43 = vpack.c.bf16 %v1082_v46, %v1078_v15  ;;  %v1140_v38 = vpack.c.bf16 %v1060_v58, %v1056_v31 }
 0x213   : > { %1224 = vmatpush1.bf16.msra.mxu1 %v1128_v3  ;;  %1190 = vmatprep.subr.bf16.mxu0 %v1143_v41  ;;  %v1065_v41 = vmul.f32 %v2719_v51, %v3390_v28  ;;  %v1064_v3 = vmul.f32 %v2767_v2, %v3394_v0  ;;  %v1152_v17 = vpack.c.bf16 %v1084_v14, %v1080_v54 }
 0x214   : > { %1225 = vmatprep.subr.bf16.mxu1 %v1133_v36  ;;  %v1073_v36 = vmul.f32 %v2719_v51, %v3396_v5 }
 0x215   : > { %v1145_v50 = vpack.c.bf16 %v1069_v16, %v1065_v41  ;;  %v1144_v1 = vpack.c.bf16 %v1068_v42, %v1064_v3 }
 0x216   : > { %1191 = vmatpush1.bf16.msra.mxu0 %v1142_v19  ;;  %v1149_v18 = vpack.c.bf16 %v1077_v9, %v1073_v36  ;;  %v3400_v19 = vld [vmem:[#allocation70_spill] sm:$0xff]  ;;  %v1275_v36 = vld [vmem:[#allocation3] sm:$0xff]  ;;  %v1276_v9 = vld [vmem:[#allocation4] sm:$0xff] }
 0x217   : > { %1226 = vmatpush1.bf16.msra.mxu1 %v1132_v47  ;;  %1192 = vmatprep.subr.bf16.mxu0 %v1147_v27  ;;  %v1081_v27 = vmul.f32 %v2719_v51, %v3400_v19  ;;  %v1148_v47 = vpack.c.bf16 %v1076_v21, %v1072_v61  ;;  %v1298_v61 = vsub.f32 0.0, %v1275_v36 }
 0x218   : > { %1227 = vmatprep.subr.bf16.mxu1 %v1137_v13  ;;  %v3404_v13 = vld [vmem:[#allocation76_spill] sm:$0xff] }
 0x219   : > { %v1153_v30 = vpack.c.bf16 %v1085_v48, %v1081_v27  ;;  %v1089_v56 = vmul.f32 %v2719_v51, %v3404_v13 }
 0x21a   : > { %1193 = vmatpush1.bf16.msra.mxu0 %v1146_v33  ;;  %v1257_v33 = vlaneseq }
 0x21b   : > { %1228 = vmatpush1.bf16.msra.mxu1 %v1136_v39  ;;  %1194 = vmatprep.subr.bf16.mxu0 %v1151_v26  ;;  %v1088_v26 = vmul.f32 %v2767_v2, %v2704_v35  ;;  %v1157_v63 = vpack.c.bf16 %v1093_v55, %v1089_v56 }
 0x21c   : > { %1229 = vmatprep.subr.bf16.mxu1 %v1141_v59  ;;  %v1258_v29 = vand.u32 127, %v1257_v33 }
 0x21d   : > { %v1156_v62 = vpack.c.bf16 %v1092_v23, %v1088_v26 }
 0x21e   : > { %1195 = vmatpush1.bf16.msra.mxu0 %v1150_v43  ;;  %v1259_v51 = vadd.s32 128, %v1258_v29  ;;  %v2986_v37 = vadd.s32 %v1263_v40, %v1258_v29  ;;  %v1260_v39 = vadd.s32 256, %v1258_v29  ;;  %v1261_v45 = vadd.s32 384, %v1258_v29 }
 0x21f   : > { %1230 = vmatpush1.bf16.msra.mxu1 %v1140_v38  ;;  %1196 = vmatprep.subr.bf16.mxu0 %v1155_v25 }
 0x220   : > { %1231 = vmatprep.subr.bf16.mxu1 %v1145_v50  ;;  %v2988_v52 = vadd.s32 %v1263_v40, %v1259_v51  ;;  %v2998_v58 = vadd.s32 %v1263_v40, %v1260_v39  ;;  %v3010_v41 = vadd.s32 %v1263_v40, %v1261_v45 }
 0x222   : > { %1197 = vmatpush1.bf16.msra.mxu0 %v1154_v12 }
 0x223   : > { %1232 = vmatpush1.bf16.msra.mxu1 %v1144_v1 }
 0x224   : > { %1233 = vmatprep.subr.bf16.mxu1 %v1149_v18 }
 0x225   : > { %1199 = vmatmul.mubr.bf16.vlgmr.msra.gmra.mrb[0].mxu0 %v1495_v7 }
 0x227   : > { %1234 = vmatpush1.bf16.msra.mxu1 %v1148_v47 }
 0x228   : > { %1235 = vmatprep.subr.bf16.mxu1 %v1153_v30 }
 0x22b   : > { %1236 = vmatpush1.bf16.msra.mxu1 %v1152_v17 }
 0x22c   : > { %1237 = vmatprep.subr.bf16.mxu1 %v1157_v63 }
 0x22f   : > { %1238 = vmatpush1.bf16.msra.mxu1 %v1156_v62 }
 0x232   : > { %1240 = vmatmul.mubr.bf16.vlgmr.msra.gmra.mrb[0].mxu1 %v1495_v7 }
 0x234   : > { %v2990_v44 = vpop.permute.xlu0 %1269 }
 0x235   : > { %vm1271_vm11 = vcmp.eq.s32.totalorder %v2986_v37, %v2990_v44  ;;  %vm1272_vm12 = vcmp.eq.s32.totalorder %v2988_v52, %v2990_v44  ;;  %vm1273_vm13 = vcmp.eq.s32.totalorder %v2998_v58, %v2990_v44  ;;  %vm1274_vm14 = vcmp.eq.s32.totalorder %v3010_v41, %v2990_v44 }
 0x2f8   : > { %v2980_v15 = vpop.f32.mrb[0].mxu0 }
 0x2f9   : > { %v2984_v46 = vpop.f32.mrb[1].mxu0  ;;  %v1497_v20 = vclamps-f32 %v2980_v15, 1.0 }
 0x2fa   : > { %v1204_v35 = vpop.f32.mrb[2].mxu0  ;;  %v1498_v31 = vclamps-f32 %v2984_v46, 1.0 }
 0x2fb   : > { %v1205_v2 = vpop.f32.mrb[3].mxu0  ;;  %v1277_v59 = vsel %vm1271_vm11, %v1497_v20, 0.0 }
 0x2fc   : > { %v1278_v28 = vsel %vm1272_vm12, %v1498_v31, 0.0 }
 0x2fd   : > { %v1281_v16 = vadd.f32 %v1278_v28, %v1277_v59 }
 0x305   : > { %v1241_v60 = vpop.f32.mrb[0].mxu1 }
 0x306   : > { %v1499_v43 = vclamps-f32 %v1241_v60, 1.0  ;;  %v1243_v25 = vpop.f32.mrb[1].mxu1 }
 0x307   : > { %v1500_v8 = vclamps-f32 %v1243_v25, 1.0  ;;  %v1245_v10 = vpop.f32.mrb[2].mxu1 }
 0x308   : > { %v1246_v24 = vpop.f32.mrb[3].mxu1  ;;  %v1279_v22 = vsel %vm1273_vm13, %v1499_v43, 0.0 }
 0x309   : > { %v1282_v38 = vadd.f32 %v1281_v16, %v1279_v22  ;;  %v1280_v0 = vsel %vm1274_vm14, %v1500_v8, 0.0 }
 0x30b   : > { %v1283_v3 = vadd.f32 %v1282_v38, %v1280_v0 }
 0x30d   : > { %1284 = vadd.xlane.f32.xlu0 %v1283_v3 }
 0x39a   : > { %v1285_v4 = vpop.xlane.xlu0 %1284 }
 0x39b   : > { %v1286_v42 = vmul.f32 %v1285_v4, %v1285_v4  ;;  %v1295_v49 = vmul.f32 %v1285_v4, %v1275_v36  ;;  %vm1299_vm1 = vcmp.gt.f32.partialorder %v1285_v4, %v1298_v61 }
 0x39d   : > { %v1287_v50 = vsub.f32 1.0, %v1286_v42 }
 0x39f   : > { %1636 = vrsqrt.f32 %v1287_v50  ;;  %vm1290_vm15 = vcmp.eq.f32.partialorder %v1287_v50, inf  ;;  %v1293_v12 = vand.u32 2147483648, %v1287_v50  ;;  %vm1292_vm0 = vcmp.eq.f32.partialorder %v1287_v50, 0.0 }
 0x3a9   : > { %v1637_v5 = vpop.eup %1636 }
 0x3aa   : > { %v1289_v6 = vmul.f32 %v1637_v5, %v1287_v50 }
 0x3ac   : > { %v1291_v1 = vsel %vm1290_vm15, %v1287_v50, %v1289_v6 }
 0x3ad   : > { %v1294_v32 = vsel %vm1292_vm0, %v1293_v12, %v1291_v1 }
 0x3ae   : > { %v1296_v21 = vmul.f32 %v1294_v32, %v1276_v9 }
 0x3b0   : > { %v1297_v18 = vsub.f32 %v1295_v49, %v1296_v21 }
 0x3b2   : > { %v1300_v19 = vsel %vm1299_vm1, %v1297_v18, %v1285_v4 }
 0x3b3   : > { %1303 = vperm.xlu1 %1617, %v1300_v19  }
 0x3b4   : > { %1709 = shalt.err (!%p1706_p12)
}
 0x3b5   : > { %s1710_s22 = scalar_lea.hbm %s3123_s4, 128 }
 0x3b6   : > { %p1711_p2 = scmp.ne.s32.totalorder %s3123_s4, %s1710_s22  ;;  %p1716_p13 = scmp.lt.u32.totalorder %s1710_s22, %s3123_s4 }
 0x3b8   : > { %p1712_p6 = pnand %p1711_p2, %p3406_p11 }
 0x3ba   : > { %p1713_p8 = pneg %p1712_p6 }
 0x3bc   : > { %p1718_p7 = pnand %p1716_p13, %p1713_p8 }
 0x3be   : > { %1721 = shalt.err (!%p1718_p7)
}
 0x3bf   : > { %1524 = dma.vmem_to_hbm [thread:$0]  (%p3406_p11), %s1349_s13, 128, %s3123_s4, [#allocation12]  }
 0x3c0   : > { %s1335_s12 = sshll.u32 %s2028_s7, 4  ;;  %s3046_s23 = scalar_lea.hbm %s3122_s3, %s1501_s26  ;;  %s3064_s12 = int_to_ptr.vmem [resolvable:$true] %s1335_s12 }
 0x3c1   : > { %s1319_s18 = scalar_lea.sflag [#allocation7], %s2017_s5  ;;  %s1722_s26 = scalar_lea.vmem %s3064_s12, 512 }
 0x3c2   : > { %p1723_p5 = scmp.ne.s32.totalorder %s3064_s12, %s1722_s26  ;;  %p3407_p10 = scmp.ne.s32.totalorder %s3222_s28, 0 }
 0x3c3   : > { %s1827_s13 = smov [#allocation10]  }
 0x3c4   : > { %p1724_p1 = pnand %p1723_p5, %p3407_p10  ;;  %s1726_s22 = sshll.u32 %s1827_s13, 4  ;;  %s1727_s22 = int_to_ptr.vmem [resolvable:$false] %s1726_s22 }
 0x3c5   : > { %s1728_s11 = scalar_lea.vmem %s1727_s22, 1024  ;;  %p1729_p9 = scmp.lt.s32.totalorder %s3064_s12, %s1727_s22 }
 0x3c6   : > { %p1725_p0 = pneg %p1724_p1  ;;  %p1730_p3 = scmp.lt.s32.totalorder %s1728_s11, %s1722_s26 }
 0x3c8   : > { %p1731_p4 = por %p1730_p3, %p1729_p9 }
 0x3ca   : > { %p1732_p12 = pnand %p1731_p4, %p1725_p0 }
 0x432   : > { %v1304_v27 = vpop.permute.xlu1 %1303 }
 0x433   : > { %v1306_v34 = vsel %vm1271_vm11, %v1304_v27, %v1497_v20  ;;  %v1307_v48 = vsel %vm1272_vm12, %v1304_v27, %v1498_v31  ;;  %v1308_v57 = vsel %vm1273_vm13, %v1304_v27, %v1499_v43  ;;  %v1309_v7 = vsel %vm1274_vm14, %v1304_v27, %v1500_v8 }
 0x434   : > { %v1310_v47 = vmul.f32 32.0, %v1306_v34  ;;  %v1311_v53 = vmul.f32 32.0, %v1307_v48  ;;  %v1312_v54 = vmul.f32 32.0, %v1308_v57  ;;  %v1313_v14 = vmul.f32 32.0, %v1309_v7 }
 0x436   : > { %1314 = vst [vmem:[%s2028_s7] sm:$0xff] %v1310_v47  ;;  %1315 = vst [vmem:[%s2028_s7 + $0x8] sm:$0xff] %v1311_v53 }
 0x437   : > { %1316 = vst [vmem:[%s2028_s7 + $0x10] sm:$0xff] %v1312_v54  ;;  %1317 = vst [vmem:[%s2028_s7 + $0x18] sm:$0xff] %v1313_v14 }
 0x438   : > { %1735 = shalt.err (!%p1732_p12)
}
 0x439   : > { %s1736_s5 = scalar_lea.hbm %s3046_s23, 512  ;;  %s1740_s21 = scalar_lea.hbm %s3122_s3, 1024 }
 0x43a   : > { %p1737_p2 = scmp.ne.s32.totalorder %s3046_s23, %s1736_s5  ;;  %p1741_p13 = scmp.lt.u32.totalorder %s3046_s23, %s3122_s3 }
 0x43b   : > { %p1742_p7 = scmp.lt.u32.totalorder %s1740_s21, %s1736_s5  ;;  %p1744_p1 = scmp.lt.u32.totalorder %s1736_s5, %s3046_s23 }
 0x43c   : > { %p1738_p6 = pnand %p1737_p2, %p3407_p10 }
 0x43d   : > { %p1743_p5 = por %p1742_p7, %p1741_p13 }
 0x43e   : > { %p1739_p8 = pneg %p1738_p6 }
 0x43f   : > { %p1745_p0 = por %p1744_p1, %p1743_p5 }
 0x441   : > { %p1746_p9 = pnand %p1745_p0, %p1739_p8 }
 0x443   : > { %1749 = shalt.err (!%p1746_p9)
}
 0x444   : > { %1522 = dma.vmem_to_hbm [thread:$0]  (%p3407_p10), %s3064_s12, 512, %s3046_s23, %s1319_s18  }
 0x445   : > { %1783 = dma.done.wait (%p3406_p11), [#allocation12], 128  }
 0x446   : > { %1785 = vsyncadd (%p3406_p11), [#allocation12], 4294967168 }
 0x447 PF: > { %s1364_s27 = sand.u32 1, %s1792_s15   ;;  %p3408_p3 = scmp.ne.s32.totalorder %s3223_s29, 0 }
 0x448   : > { %p3409_p4 = scmp.ge.s32.totalorder %s1812_s20, 2  ;;  %s1365_s8 = scalar_lea.sflag [#allocation7], %s1364_s27 }
 0x44a   : > { %p1537_p12 = pnand %p3409_p4, %p3408_p3 }
 0x44c   : > { %1787 = dma.done.wait (!%p1537_p12), %s1365_s8, 512  }
 0x44d   : > { %1789 = vsyncadd (!%p1537_p12), %s1365_s8, 4294966784  ;;  %s23_s20 = sadd.s32 1, %s1812_s20   ;;  %s3410_s15 = smov %s1796_s16 }
 0x44e   : > { %p20_p2 = scmp.ge.s32.totalorder %s23_s20, 4   ;;  %s3411_s16 = smov %s1800_s17 }
 0x44f   : > { %s3412_s17 = smov %s1978_s10  ;;  %s3413_s18 = smov %s1808_s19 }
 0x450   : > { %s3414_s19 = smov %s3416_s9  ;;  %22 = sbr.rel (!%p20_p2) target bundleno = 8 (0x8), region = 99 }
 0x457   :  { %1370 = vsyncpa [#allocation6], 1 }
 0x458   :  { %1372 = vsyncpa [#allocation6 + $0x1], 1 }
 0x459   :  { %1373 = vsyncpa [#allocation9], 1 }
 0x45a   :  { %1375 = vsyncpa [#allocation9 + $0x1], 1 }
 0x45b   :  { %1376 = vsyncpa [#allocation7], 1 }
 0x45c   :  { %1378 = vsyncpa [#allocation7 + $0x1], 1 }
 0x45d   :  { %1379 = vsyncpa [#allocation12], 1 }

</bundles_post_ra>
